<compile_context>
chip_gen: v7x
topology: tpu7x:2x2x1
jax: 0.10.0
libtpu: 0.0.40
codegen_flags: <defaults>
</compile_context>

<pallas_src>
import functools

import jax
import jax.numpy as jnp
from jax.experimental import pallas as pl
from jax.experimental.pallas import tpu as pltpu


def _disc_kernel(x_ref, w1_ref, b1_ref, w2_ref, b2_ref, w3_ref, b3_ref,
                 w4_ref, b4_ref, o_ref):
    x = x_ref[...]            # (block_b, 3)  f32
    w1 = w1_ref[...]          # (3, 128)      f32

    # Layer 1: Linear(3,128) + ReLU on the VPU (K=3 would waste an MXU pass).
    h = (x[:, 0:1] * w1[0:1, :]
         + x[:, 1:2] * w1[1:2, :]
         + x[:, 2:3] * w1[2:3, :]) + b1_ref[...]
    h = jnp.maximum(h, 0.0)                      # (block_b, 128) f32
    # Dropout(0.3): identity in eval mode.

    # Layer 2: Linear(128,128) + ReLU. bf16 MXU operands, f32 accumulation.
    h = jnp.dot(h.astype(jnp.bfloat16), w2_ref[...],
                preferred_element_type=jnp.float32)
    h = jnp.maximum(h + b2_ref[...], 0.0)        # (block_b, 128) f32

    # Layer 3: Linear(128,64) + ReLU.
    h = jnp.dot(h.astype(jnp.bfloat16), w3_ref[...],
                preferred_element_type=jnp.float32)
    h = jnp.maximum(h + b3_ref[...], 0.0)        # (block_b, 64) f32

    # Layer 4: Linear(64,1) + Sigmoid, emitted lane-dense as [1, block_b].
    # w4 is stored as [1, 64]; contract both 64-dims (== w4 @ h.T on the MXU).
    logits = jax.lax.dot_general(
        w4_ref[...], h,
        dimension_numbers=(((1,), (1,)), ((), ())),
        preferred_element_type=jnp.float32)      # (1, block_b)
    o_ref[...] = jax.nn.sigmoid(logits + b4_ref[...])


@functools.partial(jax.jit, static_argnames=("block_b",))
def discriminator_forward(x, params, block_b=256):
    """x: [B, 3] float32 -> [B, 1] float32 (sigmoid probabilities)."""
    B, in_dim = x.shape
    assert in_dim == 3
    w1, b1, w2, b2, w3, b3, w4, b4 = params

    num_blocks = pl.cdiv(B, block_b)
    b_pad = num_blocks * block_b
    if b_pad != B:  # ragged tail: zero-pad, slice after the kernel
        x = jnp.pad(x, ((0, b_pad - B), (0, 0)))

    # bf16 operands for the two big MXU layers (f32 accumulation in-kernel).
    w2_bf = w2.astype(jnp.bfloat16)
    w3_bf = w3.astype(jnp.bfloat16)

    def tile_spec(shape):
        return pl.BlockSpec(shape, lambda i: (i, 0))

    def resident_spec(shape):
        # Constant block index -> tile stays VMEM-resident across grid steps.
        return pl.BlockSpec(shape, lambda i: (0, 0))

    grid_spec = pltpu.PrefetchScalarGridSpec(
        num_scalar_prefetch=0,
        grid=(num_blocks,),
        in_specs=[
            tile_spec((block_b, 3)),                       # x tile
            resident_spec(w1.shape), resident_spec(b1.shape),
            resident_spec(w2_bf.shape), resident_spec(b2.shape),
            resident_spec(w3_bf.shape), resident_spec(b3.shape),
            resident_spec(w4.shape), resident_spec(b4.shape),
        ],
        # Lane-dense output: step i writes columns [i*block_b, (i+1)*block_b).
        out_specs=pl.BlockSpec((1, block_b), lambda i: (0, i)),
    )

    out = pl.pallas_call(
        _disc_kernel,
        out_shape=jax.ShapeDtypeStruct((1, b_pad), jnp.float32),
        grid_spec=grid_spec,
        compiler_params=pltpu.CompilerParams(
            dimension_semantics=("parallel",)),
    )(x, w1, b1, w2_bf, b2, w3_bf, b3, w4, b4)

    return out.reshape(b_pad, 1)[:B]


def init_params(key):
    """Deterministic init matching PyTorch Linear shapes.

    Weights stored transposed as [in, out]; biases as [1, out]. The final
    layer's weight is stored as [1, 64] (row vector) so the kernel can emit a
    lane-dense [1, block_b] output.
    Init mimics torch.nn.Linear default: U(-1/sqrt(fan_in), 1/sqrt(fan_in)).
    """
    dims = [(3, 128), (128, 128), (128, 64), (64, 1)]
    params = []
    for (fan_in, fan_out) in dims:
        key, kw, kb = jax.random.split(key, 3)
        bound = 1.0 / jnp.sqrt(jnp.float32(fan_in))
        if fan_out == 1:
            w = jax.random.uniform(kw, (1, fan_in), jnp.float32,
                                   minval=-bound, maxval=bound)
            b = jax.random.uniform(kb, (1, 1), jnp.float32,
                                   minval=-bound, maxval=bound)
        else:
            w = jax.random.uniform(kw, (fan_in, fan_out), jnp.float32,
                                   minval=-bound, maxval=bound)
            b = jax.random.uniform(kb, (1, fan_out), jnp.float32,
                                   minval=-bound, maxval=bound)
        params.extend([w, b])
    return tuple(params)


def reference_forward(x, params):
    """Pure-JAX f32 reference (eval-mode dropout = identity)."""
    w1, b1, w2, b2, w3, b3, w4, b4 = params
    h = jnp.maximum(x @ w1 + b1, 0.0)
    h = jnp.maximum(h @ w2 + b2, 0.0)
    h = jnp.maximum(h @ w3 + b3, 0.0)
    return jax.nn.sigmoid(h @ w4.T + b4)


if __name__ == "__main__":
    key = jax.random.PRNGKey(0)
    kx, kx2, kp = jax.random.split(key, 3)
    params = init_params(kp)

    # Primary case: grid of 2 x 256 rows (even grid -> both v7x TCs get work).
    B = 512
    x = jax.random.normal(kx, (B, 3), jnp.float32)
    out = jax.block_until_ready(discriminator_forward(x, params, block_b=256))
    ref = reference_forward(x, params)
    assert out.shape == (B, 1)
    # bf16 MXU operands with f32 accumulation -> small numeric delta vs f32 ref.
    assert jnp.allclose(out, ref, atol=2e-2, rtol=2e-2), "mismatch vs reference"

    # Ragged batch: zero-padded to a block_b multiple inside the wrapper.
    B2 = 300
    x2 = jax.random.normal(kx2, (B2, 3), jnp.float32)
    out2 = jax.block_until_ready(discriminator_forward(x2, params, block_b=256))
    ref2 = reference_forward(x2, params)
    assert out2.shape == (B2, 1)
    assert jnp.allclose(out2, ref2, atol=2e-2, rtol=2e-2), "mismatch (ragged batch)"

    print("KERNEL_OK")
</pallas_src>

<mosaic_0001>
module attributes {stable_mosaic.version = 11 : i64} {
  func.func @_disc_kernel(%arg0: i32, %arg1: memref<256x3xf32, #tpu.memory_space<vmem>>, %arg2: memref<3x128xf32, #tpu.memory_space<vmem>>, %arg3: memref<1x128xf32, #tpu.memory_space<vmem>>, %arg4: memref<128x128xbf16, #tpu.memory_space<vmem>>, %arg5: memref<1x128xf32, #tpu.memory_space<vmem>>, %arg6: memref<128x64xbf16, #tpu.memory_space<vmem>>, %arg7: memref<1x64xf32, #tpu.memory_space<vmem>>, %arg8: memref<1x64xf32, #tpu.memory_space<vmem>>, %arg9: memref<1x1xf32, #tpu.memory_space<vmem>>, %arg10: memref<1x256xf32, #tpu.memory_space<vmem>>) attributes {dimension_semantics = [#tpu.dimension_semantics<parallel>], iteration_bounds = array<i64: 2>, scalar_prefetch = 0 : i64, scratch_operands = 0 : i64, tpu.core_type = #tpu.core_type<tc>, window_params = [{transform_indices = @transform_0, window_bounds = array<i64: 256, 3>}, {pipeline_mode = #tpu.pipeline_mode<synchronous>, transform_indices = @transform_1, window_bounds = array<i64: 3, 128>}, {pipeline_mode = #tpu.pipeline_mode<synchronous>, transform_indices = @transform_2, window_bounds = array<i64: 1, 128>}, {pipeline_mode = #tpu.pipeline_mode<synchronous>, transform_indices = @transform_3, window_bounds = array<i64: 128, 128>}, {pipeline_mode = #tpu.pipeline_mode<synchronous>, transform_indices = @transform_4, window_bounds = array<i64: 1, 128>}, {pipeline_mode = #tpu.pipeline_mode<synchronous>, transform_indices = @transform_5, window_bounds = array<i64: 128, 64>}, {pipeline_mode = #tpu.pipeline_mode<synchronous>, transform_indices = @transform_6, window_bounds = array<i64: 1, 64>}, {pipeline_mode = #tpu.pipeline_mode<synchronous>, transform_indices = @transform_7, window_bounds = array<i64: 1, 64>}, {pipeline_mode = #tpu.pipeline_mode<synchronous>, transform_indices = @transform_8, window_bounds = array<i64: 1, 1>}, {transform_indices = @transform_9, window_bounds = array<i64: 1, 256>}]} {
    %c0 = arith.constant 0 : index
    %c0_0 = arith.constant 0 : index
    %0 = vector.load %arg1[%c0, %c0_0] : memref<256x3xf32, #tpu.memory_space<vmem>>, vector<256x3xf32>
    %c0_1 = arith.constant 0 : index
    %c0_2 = arith.constant 0 : index
    %1 = vector.load %arg2[%c0_1, %c0_2] : memref<3x128xf32, #tpu.memory_space<vmem>>, vector<3x128xf32>
    %2 = vector.extract_strided_slice %0 {offsets = [0, 0], sizes = [256, 1], strides = [1, 1]} : vector<256x3xf32> to vector<256x1xf32>
    %3 = vector.extract_strided_slice %1 {offsets = [0, 0], sizes = [1, 128], strides = [1, 1]} : vector<3x128xf32> to vector<1x128xf32>
    %4 = vector.broadcast %2 : vector<256x1xf32> to vector<256x128xf32>
    %5 = vector.broadcast %3 : vector<1x128xf32> to vector<256x128xf32>
    %6 = arith.mulf %4, %5 : vector<256x128xf32>
    %7 = vector.extract_strided_slice %0 {offsets = [0, 1], sizes = [256, 1], strides = [1, 1]} : vector<256x3xf32> to vector<256x1xf32>
    %8 = vector.extract_strided_slice %1 {offsets = [1, 0], sizes = [1, 128], strides = [1, 1]} : vector<3x128xf32> to vector<1x128xf32>
    %9 = vector.broadcast %7 : vector<256x1xf32> to vector<256x128xf32>
    %10 = vector.broadcast %8 : vector<1x128xf32> to vector<256x128xf32>
    %11 = arith.mulf %9, %10 : vector<256x128xf32>
    %12 = arith.addf %6, %11 : vector<256x128xf32>
    %13 = vector.extract_strided_slice %0 {offsets = [0, 2], sizes = [256, 1], strides = [1, 1]} : vector<256x3xf32> to vector<256x1xf32>
    %14 = vector.extract_strided_slice %1 {offsets = [2, 0], sizes = [1, 128], strides = [1, 1]} : vector<3x128xf32> to vector<1x128xf32>
    %15 = vector.broadcast %13 : vector<256x1xf32> to vector<256x128xf32>
    %16 = vector.broadcast %14 : vector<1x128xf32> to vector<256x128xf32>
    %17 = arith.mulf %15, %16 : vector<256x128xf32>
    %18 = arith.addf %12, %17 : vector<256x128xf32>
    %c0_3 = arith.constant 0 : index
    %c0_4 = arith.constant 0 : index
    %19 = vector.load %arg3[%c0_3, %c0_4] : memref<1x128xf32, #tpu.memory_space<vmem>>, vector<1x128xf32>
    %20 = vector.broadcast %19 : vector<1x128xf32> to vector<256x128xf32>
    %21 = arith.addf %18, %20 : vector<256x128xf32>
    %cst = arith.constant 0.000000e+00 : f32
    %22 = vector.broadcast %cst : f32 to vector<256x128xf32>
    %23 = arith.maximumf %21, %22 : vector<256x128xf32>
    %24 = arith.truncf %23 : vector<256x128xf32> to vector<256x128xbf16>
    %c0_5 = arith.constant 0 : index
    %c0_6 = arith.constant 0 : index
    %25 = vector.load %arg4[%c0_5, %c0_6] : memref<128x128xbf16, #tpu.memory_space<vmem>>, vector<128x128xbf16>
    %cst_7 = arith.constant dense<0.000000e+00> : vector<256x128xf32>
    %26 = tpu.matmul %24, %25, %cst_7 {dimension_numbers = #tpu.dot_dimension_numbers<[1], [0], [0], [1], [0, 0, 1, 1], [], []>} : vector<256x128xbf16>, vector<128x128xbf16>, vector<256x128xf32> -> vector<256x128xf32>
    %c0_8 = arith.constant 0 : index
    %c0_9 = arith.constant 0 : index
    %27 = vector.load %arg5[%c0_8, %c0_9] : memref<1x128xf32, #tpu.memory_space<vmem>>, vector<1x128xf32>
    %28 = vector.broadcast %27 : vector<1x128xf32> to vector<256x128xf32>
    %29 = arith.addf %26, %28 : vector<256x128xf32>
    %cst_10 = arith.constant 0.000000e+00 : f32
    %30 = vector.broadcast %cst_10 : f32 to vector<256x128xf32>
    %31 = arith.maximumf %29, %30 : vector<256x128xf32>
    %32 = arith.truncf %31 : vector<256x128xf32> to vector<256x128xbf16>
    %c0_11 = arith.constant 0 : index
    %c0_12 = arith.constant 0 : index
    %33 = vector.load %arg6[%c0_11, %c0_12] : memref<128x64xbf16, #tpu.memory_space<vmem>>, vector<128x64xbf16>
    %cst_13 = arith.constant dense<0.000000e+00> : vector<256x64xf32>
    %34 = tpu.matmul %32, %33, %cst_13 {dimension_numbers = #tpu.dot_dimension_numbers<[1], [0], [0], [1], [0, 0, 1, 1], [], []>} : vector<256x128xbf16>, vector<128x64xbf16>, vector<256x64xf32> -> vector<256x64xf32>
    %c0_14 = arith.constant 0 : index
    %c0_15 = arith.constant 0 : index
    %35 = vector.load %arg7[%c0_14, %c0_15] : memref<1x64xf32, #tpu.memory_space<vmem>>, vector<1x64xf32>
    %36 = vector.broadcast %35 : vector<1x64xf32> to vector<256x64xf32>
    %37 = arith.addf %34, %36 : vector<256x64xf32>
    %cst_16 = arith.constant 0.000000e+00 : f32
    %38 = vector.broadcast %cst_16 : f32 to vector<256x64xf32>
    %39 = arith.maximumf %37, %38 : vector<256x64xf32>
    %c0_17 = arith.constant 0 : index
    %c0_18 = arith.constant 0 : index
    %40 = vector.load %arg8[%c0_17, %c0_18] : memref<1x64xf32, #tpu.memory_space<vmem>>, vector<1x64xf32>
    %cst_19 = arith.constant dense<0.000000e+00> : vector<1x256xf32>
    %41 = tpu.matmul %40, %39, %cst_19 {dimension_numbers = #tpu.dot_dimension_numbers<[1], [1], [0], [0], [0, 0, 1, 0], [], []>} : vector<1x64xf32>, vector<256x64xf32>, vector<1x256xf32> -> vector<1x256xf32>
    %c0_20 = arith.constant 0 : index
    %c0_21 = arith.constant 0 : index
    %42 = vector.load %arg9[%c0_20, %c0_21] : memref<1x1xf32, #tpu.memory_space<vmem>>, vector<1x1xf32>
    %43 = vector.broadcast %42 : vector<1x1xf32> to vector<1x256xf32>
    %44 = arith.addf %41, %43 : vector<1x256xf32>
    %45 = arith.negf %44 : vector<1x256xf32>
    %46 = math.exp %45 : vector<1x256xf32>
    %cst_22 = arith.constant 1.000000e+00 : f32
    %47 = vector.broadcast %cst_22 : f32 to vector<1x256xf32>
    %48 = arith.addf %47, %46 : vector<1x256xf32>
    %49 = arith.divf %47, %48 : vector<1x256xf32>
    %c0_23 = arith.constant 0 : index
    %c0_24 = arith.constant 0 : index
    %50 = vector.load %arg10[%c0_23, %c0_24] : memref<1x256xf32, #tpu.memory_space<vmem>>, vector<1x256xf32>
    tpu.vector_store %arg10[%c0_23, %c0_24], %49 {strides = array<i32>} : memref<1x256xf32, #tpu.memory_space<vmem>>, vector<1x256xf32>,
    return
  }
  func.func @transform_0(%arg0: i32) -> (i32, i32) {
    %c0_i32 = arith.constant 0 : i32
    %c0_i32_0 = arith.constant 0 : i32
    return %arg0, %c0_i32 : i32, i32
  }
  func.func @transform_1(%arg0: i32) -> (i32, i32) {
    %c0_i32 = arith.constant 0 : i32
    %c0_i32_0 = arith.constant 0 : i32
    %c0_i32_1 = arith.constant 0 : i32
    return %c0_i32, %c0_i32_0 : i32, i32
  }
  func.func @transform_2(%arg0: i32) -> (i32, i32) {
    %c0_i32 = arith.constant 0 : i32
    %c0_i32_0 = arith.constant 0 : i32
    %c0_i32_1 = arith.constant 0 : i32
    return %c0_i32, %c0_i32_0 : i32, i32
  }
  func.func @transform_3(%arg0: i32) -> (i32, i32) {
    %c0_i32 = arith.constant 0 : i32
    %c0_i32_0 = arith.constant 0 : i32
    %c0_i32_1 = arith.constant 0 : i32
    return %c0_i32, %c0_i32_0 : i32, i32
  }
  func.func @transform_4(%arg0: i32) -> (i32, i32) {
    %c0_i32 = arith.constant 0 : i32
    %c0_i32_0 = arith.constant 0 : i32
    %c0_i32_1 = arith.constant 0 : i32
    return %c0_i32, %c0_i32_0 : i32, i32
  }
  func.func @transform_5(%arg0: i32) -> (i32, i32) {
    %c0_i32 = arith.constant 0 : i32
    %c0_i32_0 = arith.constant 0 : i32
    %c0_i32_1 = arith.constant 0 : i32
    return %c0_i32, %c0_i32_0 : i32, i32
  }
  func.func @transform_6(%arg0: i32) -> (i32, i32) {
    %c0_i32 = arith.constant 0 : i32
    %c0_i32_0 = arith.constant 0 : i32
    %c0_i32_1 = arith.constant 0 : i32
    return %c0_i32, %c0_i32_0 : i32, i32
  }
  func.func @transform_7(%arg0: i32) -> (i32, i32) {
    %c0_i32 = arith.constant 0 : i32
    %c0_i32_0 = arith.constant 0 : i32
    %c0_i32_1 = arith.constant 0 : i32
    return %c0_i32, %c0_i32_0 : i32, i32
  }
  func.func @transform_8(%arg0: i32) -> (i32, i32) {
    %c0_i32 = arith.constant 0 : i32
    %c0_i32_0 = arith.constant 0 : i32
    %c0_i32_1 = arith.constant 0 : i32
    return %c0_i32, %c0_i32_0 : i32, i32
  }
  func.func @transform_9(%arg0: i32) -> (i32, i32) {
    %c0_i32 = arith.constant 0 : i32
    %c0_i32_0 = arith.constant 0 : i32
    return %c0_i32, %arg0 : i32, i32
  }
}

</mosaic_0001>

<bundles_post_ra>
// kernel: discriminator_forward.1
= control target key start
LH: loop header
LB: loop body
LE: loop exit
PB: predicated region body
PF: predicated region fallthrough
CT: control target
= control target key end

     0   :  { %s3108_s0 = inlined_call_operand.vmem [shape: f32[512,3], index: 0, kind: input, shape index: {}]   ;;  %s3109_s1 = inlined_call_operand.vmem [shape: f32[3,128], index: 1, kind: input, shape index: {}]   ;;  %s3110_s2 = inlined_call_operand.vmem [shape: f32[1,128], index: 2, kind: input, shape index: {}]   ;;  %s3111_s3 = inlined_call_operand.vmem [shape: bf16[128,128], index: 3, kind: input, shape index: {}]   ;;  %s3112_s4 = inlined_call_operand.vmem [shape: f32[1,128], index: 4, kind: input, shape index: {}]   ;;  %s3113_s5 = inlined_call_operand.vmem [shape: bf16[128,64], index: 5, kind: input, shape index: {}]   ;;  %s3114_s6 = inlined_call_operand.vmem [shape: f32[1,64], index: 6, kind: input, shape index: {}]   ;;  %s3115_s7 = inlined_call_operand.vmem [shape: f32[1,64], index: 7, kind: input, shape index: {}]   ;;  %s3116_s8 = inlined_call_operand.<no memory space> [shape: f32[1,1], index: 8, kind: input, shape index: {}]   ;;  %s3117_s9 = inlined_call_operand.hbm [shape: f32[1,512], index: 9, kind: output, shape index: {}]  }
   0x1   :  { %v14_v0 = vstv %s3116_s8 }
   0x2   :  { %15 = vst [vmem:[#allocation2] sm:$0x1] %v14_v0 }
   0x3   :  { %16 = vsyncpa [#allocation4], 0 }
   0x4   :  { %18 = vsyncpa [#allocation4 + $0x1], 0  ;;  %s2409_s11 = smov 0   ;;  %s2411_s12 = smov 0  }
   0x5   :  { %s2413_s13 = smov 0   ;;  %s2415_s14 = smov 0  }
   0x6 LB: > { %s1879_s8 = sadd.s32 4294967295, %s2349_s14   ;;  %s1880_s15 = sadd.s32 4294967294, %s2349_s14   ;;  %s2349_s14 = sphi %s2415_s14, %s3125_s14   ;;  %s2345_s13 = sphi %s2413_s13, %s3124_s13   ;;  %s2341_s12 = sphi %s2411_s12, %s3123_s12   ;;  %s2337_s11 = sphi %s2409_s11, %s3122_s11  }
   0x7   : > { %s2432_s16 = sadd.s32 1, %s2349_s14   ;;  %s225_s17 = sadd.s32 1, %s2345_s13 }
   0x8   : > { %s222_s18 = ssub.s32 %s2349_s14, %s2432_s16  ;;  %p235_p0 = scmp.ne.s32.totalorder %s2345_s13, %s2341_s12 }
   0x9   : > { %p223_p1 = scmp.eq.s32.totalorder %s222_s18, 0  ;;  %p236_p2 = scmp.eq.s32.totalorder %s1879_s8, 1 }
   0xa   : > { %p241_p3 = scmp.ne.s32.totalorder %s2341_s12, %s2337_s11  ;;  %p242_p4 = scmp.eq.s32.totalorder %s1880_s15, 1 }
   0xb   : > { %s2442_s19 = scalar_select %p223_p1, %s2345_s13, %s225_s17  }
   0xc   : > { %p2444_p5 = por %p236_p2, %p235_p0  ;;  %p2448_p6 = por %p242_p4, %p241_p3 }
   0xd   : > { %p1883_p7 = scmp.ge.s32.totalorder %s2349_s14, 1  ;;  %p293_p8 = scmp.lt.s32.totalorder %s2349_s14, 3 }
   0xf   : > { %p294_p9 = pnand %p1883_p7, %p293_p8 }
  0x10   : > { %s2454_s22 = sshll.u32 (!%p294_p9), %s1879_s8, 5  ;;  %v2351_v1 = vmov (!%p294_p9), 1   ;;  %v2352_v2 = vmov (!%p294_p9), 0   ;;  %v2353_v10 = vmov (!%p294_p9), 2   ;;  %v2263_v18 = vld [vmem:[%s3111_s3] sm:$0xff] (!%p294_p9)   ;;  %v2264_v20 = vld [vmem:[%s3111_s3 + $0x8] sm:$0xff] (!%p294_p9)   ;;  %v530_v0 = vlaneseq (!%p294_p9) }
  0x11   : > { %297 = sbr.rel (%p294_p9) target bundleno = 1157 (0x485), region = 56  ;;  %2217 = vset.pattern.permute.xlu1 (!%p294_p9), %v2351_v1  ;;  %2216 = vset.pattern.permute.xlu0 (!%p294_p9), %v2352_v2  ;;  %p330_p10 = scmp.lt.s32.totalorder (!%p294_p9), %s2454_s22, 63  ;;  %v2265_v21 = vld [vmem:[%s3111_s3 + $0x10] sm:$0xff] (!%p294_p9)   ;;  %v2266_v24 = vld [vmem:[%s3111_s3 + $0x18] sm:$0xff] (!%p294_p9)   ;;  %v2267_v26 = vld [vmem:[%s3111_s3 + $0x20] sm:$0xff] (!%p294_p9)   ;;  %vm1600_vm0 = vcmask (!%p294_p9), 523264  }
  0x12   : > { %2029 = vmatprep.subr.bf16.mxu0 (!%p294_p9), %v2263_v18  ;;  %v2268_v27 = vld [vmem:[%s3111_s3 + $0x28] sm:$0xff] (!%p294_p9)   ;;  %v2269_v28 = vld [vmem:[%s3111_s3 + $0x30] sm:$0xff] (!%p294_p9)   ;;  %v2270_v30 = vld [vmem:[%s3111_s3 + $0x38] sm:$0xff] (!%p294_p9)   ;;  %s326_s8 = sand.u32 (!%p294_p9), 1, %s2341_s12   ;;  %vm1803_vm2 = vcmp.lt.s32.totalorder (!%p294_p9), %v530_v0, 256  ;;  %s2355_s28 = smov (!%p294_p9), [#allocation3]  }
  0x13   : > { %2030 = vmatpush3.bf16.msra.mxu0 (!%p294_p9), %v2263_v18  ;;  %vm2999_vm1 = vmpackc.low (!%p294_p9), %vm1600_vm0, %vm1600_vm0  ;;  %s1884_s15 = sshll.u32 (!%p294_p9), %s326_s8, 1  ;;  %s1807_s25 = scalar_lea.sflag (!%p294_p9), [#allocation4], %s326_s8 }
  0x14   : > { %2031 = vmatprep.subr.bf16.mxu0 (!%p294_p9), %v2264_v20  ;;  %s328_s17 = scalar_lea.vmem (!%p294_p9), [#allocation3], %s1884_s15  ;;  %s2291_s29 = sshll.u32 (!%p294_p9), %s2355_s28, 4  ;;  %s2292_s29 = int_to_ptr.vmem [resolvable:$false] %s2291_s29 }
  0x15   : > { %s1821_s18 = sshll.u32 (!%p294_p9), %s328_s17, 4  ;;  %s2293_s30 = scalar_lea.vmem (!%p294_p9), %s2292_s29, 64  ;;  %s3068_s18 = int_to_ptr.vmem [resolvable:$true] %s1821_s18 }
  0x16   : > { %s2287_s26 = scalar_lea.vmem (!%p294_p9), %s3068_s18, 32  ;;  %p2294_p0 = scmp.lt.s32.totalorder (!%p294_p9), %s3068_s18, %s2292_s29 }
  0x17   : > { %2032 = vmatpush3.bf16.msra.mxu0 (!%p294_p9), %v2264_v20  ;;  %p2288_p11 = scmp.ne.s32.totalorder (!%p294_p9), %s3068_s18, %s2287_s26  ;;  %p2295_p1 = scmp.lt.s32.totalorder (!%p294_p9), %s2293_s30, %s2287_s26 }
  0x18   : > { %s331_s23 = scalar_select %p330_p10, %s2454_s22, 63  ;;  %2033 = vmatprep.subr.bf16.mxu0 %v2265_v21 }
  0x19   : > { %p2289_p12 = pnand %p2288_p11, %p2444_p5  ;;  %p2296_p2 = por %p2295_p1, %p2294_p0 }
  0x1a   : > { %s1886_s24 = sshll.u32 %s331_s23, 3 }
  0x1b   : > { %s2463_s27 = scalar_lea.vmem %s3108_s0, %s1886_s24  ;;  %2034 = vmatpush3.bf16.msra.mxu0 %v2265_v21  ;;  %s3066_s24 = scalar_lea.hbm %s3117_s9, %s2454_s22 }
  0x1c   : > { %v337_v3 = vld [vmem:[%s2463_s27] sm:$0xff]  ;;  %v2467_v4 = vld [vmem:[%s2463_s27 + $0x8] sm:$0xff]  ;;  %v339_v5 = vld [vmem:[%s2463_s27 + $0x10] sm:$0xff]  ;;  %2035 = vmatprep.subr.bf16.mxu0 %v2266_v24  ;;  %p2290_p13 = pneg %p2289_p12 }
  0x1d   : > { %567 = vperm.xlu1 %2217, %v337_v3   ;;  %372 = vperm.xlu0 %2216, %v337_v3   ;;  %v340_v6 = vld [vmem:[%s2463_s27 + $0x18] sm:$0xff]  ;;  %v2474_v7 = vld [vmem:[%s2463_s27 + $0x20] sm:$0xff]  ;;  %v2480_v8 = vld [vmem:[%s2463_s27 + $0x48] sm:$0xff] }
  0x1e   : > { %v2484_v9 = vld [vmem:[%s2463_s27 + $0x50] sm:$0xff]  ;;  %v2489_v11 = vld [vmem:[%s2463_s27 + $0x60] sm:$0xff]  ;;  %v2493_v12 = vld [vmem:[%s2463_s27 + $0x88] sm:$0xff]  ;;  %p2297_p3 = pnand %p2296_p2, %p2290_p13 }
  0x1f   : > { %v342_v13 = vld [vmem:[%s2463_s27 + $0x28] sm:$0xff]  ;;  %v2498_v14 = vld [vmem:[%s2463_s27 + $0x90] sm:$0xff]  ;;  %v344_v16 = vld [vmem:[%s2463_s27 + $0x38] sm:$0xff]  ;;  %2036 = vmatpush3.bf16.msra.mxu0 %v2266_v24 }
  0x20   : > { %v343_v15 = vld [vmem:[%s2463_s27 + $0x30] sm:$0xff]  ;;  %v2511_v17 = vld [vmem:[%s2463_s27 + $0x68] sm:$0xff]  ;;  %v345_v22 = vld [vmem:[%s2463_s27 + $0x40] sm:$0xff]  ;;  %2037 = vmatprep.subr.bf16.mxu0 %v2267_v26 }
  0x21   : > { %571 = vperm.xlu1 %2217, %v2467_v4   ;;  %377 = vperm.xlu0 %2216, %v2467_v4   ;;  %v2518_v19 = vld [vmem:[%s2463_s27 + $0x70] sm:$0xff]  ;;  %v2531_v23 = vld [vmem:[%s2463_s27 + $0xa8] sm:$0xff]  ;;  %v348_v29 = vld [vmem:[%s2463_s27 + $0x58] sm:$0xff] }
  0x22   : > { %v2539_v25 = vld [vmem:[%s2463_s27 + $0xb0] sm:$0xff]  ;;  %v352_v31 = vld [vmem:[%s2463_s27 + $0x78] sm:$0xff]  ;;  %v2569_v32 = vld [vmem:[%s2463_s27 + $0xa0] sm:$0xff] }
  0x23   : > { %2038 = vmatpush3.bf16.msra.mxu0 %v2267_v26  ;;  %v2575_v33 = vld [vmem:[%s2463_s27 + $0xb8] sm:$0xff]  ;;  %v2581_v34 = vld [vmem:[%s2463_s27 + $0xc8] sm:$0xff]  ;;  %v2591_v35 = vld [vmem:[%s2463_s27 + $0xd0] sm:$0xff] }
  0x24   : > { %2039 = vmatprep.subr.bf16.mxu0 %v2268_v27  ;;  %v2595_v36 = vld [vmem:[%s2463_s27 + $0xe0] sm:$0xff]  ;;  %v2613_v42 = vld [vmem:[%s2463_s27 + $0xe8] sm:$0xff]  ;;  %v2622_v45 = vld [vmem:[%s2463_s27 + $0xf0] sm:$0xff] }
  0x25   : > { %2218 = vset.pattern.permute.xlu1 %v2352_v2  ;;  %382 = vperm.xlu0 %2216, %v339_v5   ;;  %v353_v41 = vld [vmem:[%s2463_s27 + $0x80] sm:$0xff]  ;;  %v356_v50 = vld [vmem:[%s2463_s27 + $0x98] sm:$0xff] }
  0x26   : > { %387 = vperm.xlu1 %2218, %v340_v6   ;;  %v2640_v52 = vld [vmem:[%s2463_s27 + $0xf8] sm:$0xff] }
  0x27   : > { %2040 = vmatpush3.bf16.msra.mxu0 %v2268_v27 }
  0x28   : > { %2041 = vmatprep.subr.bf16.mxu0 %v2269_v28 }
  0x29   : > { %392 = vperm.xlu0 %2216, %v2474_v7  }
  0x2a   : > { %2219 = vset.pattern.permute.xlu1 %v2351_v1 }
  0x2b   : > { %579 = vperm.xlu1 %2219, %v340_v6   ;;  %2042 = vmatpush3.bf16.msra.mxu0 %v2269_v28 }
  0x2c   : > { %2043 = vmatprep.subr.bf16.mxu0 %v2270_v30 }
  0x2d   : > { %417 = vperm.xlu0 %2216, %v2480_v8  }
  0x2f   : > { %2220 = vset.pattern.permute.xlu1 %v2353_v10  ;;  %2044 = vmatpush3.bf16.msra.mxu0 %v2270_v30 }
  0x30   : > { %763 = vperm.xlu1 %2220, %v337_v3  }
  0x31   : > { %422 = vperm.xlu0 %2216, %v2484_v9  }
  0x34   : > { %771 = vperm.xlu1 %2220, %v339_v5  }
  0x35   : > { %432 = vperm.xlu0 %2216, %v2489_v11  }
  0x38   : > { %775 = vperm.xlu1 %2220, %v340_v6  }
  0x39   : > { %457 = vperm.xlu0 %2216, %v2493_v12  }
  0x3c   : > { %2221 = vset.pattern.permute.xlu1 %v2352_v2 }
  0x3d   : > { %397 = vperm.xlu1 %2221, %v342_v13   ;;  %462 = vperm.xlu0 %2216, %v2498_v14  }
  0x41   : > { %2222 = vset.pattern.permute.xlu1 %v2351_v1  ;;  %2238 = vset.pattern.permute.xlu0 %v2351_v1 }
  0x42   : > { %583 = vperm.xlu1 %2222, %v2474_v7   ;;  %575 = vperm.xlu0 %2238, %v339_v5   ;;  %v2665_v5 = vshrl.u32 %v530_v0, 7 }
  0x46   : > { %2223 = vset.pattern.permute.xlu1 %v2352_v2  ;;  %587 = vperm.xlu0 %2238, %v342_v13  }
  0x47   : > { %402 = vperm.xlu1 %2223, %v343_v15  }
  0x4a   : > { %591 = vperm.xlu0 %2238, %v343_v15  }
  0x4b   : > { %407 = vperm.xlu1 %2223, %v344_v16  }
  0x4e   : > { %607 = vperm.xlu0 %2238, %v2484_v9  }
  0x4f   : > { %2224 = vset.pattern.permute.xlu1 %v2351_v1 }
  0x50   : > { %595 = vperm.xlu1 %2224, %v344_v16  }
  0x52   : > { %619 = vperm.xlu0 %2238, %v2511_v17  }
  0x54   : > { %2225 = vset.pattern.permute.xlu1 %v2353_v10 }
  0x55   : > { %783 = vperm.xlu1 %2225, %v342_v13  }
  0x56   : > { %623 = vperm.xlu0 %2238, %v2518_v19  }
  0x59   : > { %787 = vperm.xlu1 %2225, %v343_v15  }
  0x5a   : > { %639 = vperm.xlu0 %2238, %v2498_v14  }
  0x5d   : > { %2226 = vset.pattern.permute.xlu1 %v2352_v2 }
  0x5e   : > { %412 = vperm.xlu1 %2226, %v345_v22   ;;  %651 = vperm.xlu0 %2238, %v2531_v23  }
  0x62   : > { %2227 = vset.pattern.permute.xlu1 %v2351_v1  ;;  %655 = vperm.xlu0 %2238, %v2539_v25  }
  0x63   : > { %599 = vperm.xlu1 %2227, %v345_v22  }
  0x66   : > { %2245 = vset.pattern.permute.xlu0 %v2353_v10 }
  0x67   : > { %603 = vperm.xlu1 %2227, %v2480_v8   ;;  %767 = vperm.xlu0 %2245, %v2467_v4  }
  0x6b   : > { %2228 = vset.pattern.permute.xlu1 %v2352_v2  ;;  %779 = vperm.xlu0 %2245, %v2474_v7  }
  0x6c   : > { %427 = vperm.xlu1 %2228, %v348_v29  }
  0x6f   : > { %791 = vperm.xlu0 %2245, %v344_v16   ;;  %v892_v16 = vsub.s32 2, %v2665_v5 }
  0x70   : > { %2229 = vset.pattern.permute.xlu1 %v2351_v1 }
  0x71   : > { %611 = vperm.xlu1 %2229, %v348_v29  }
  0x73   : > { %799 = vperm.xlu0 %2245, %v2480_v8   ;;  %v532_v8 = vsub.s32 0, %v2665_v5 }
  0x75   : > { %2230 = vset.pattern.permute.xlu1 %v2353_v10 }
  0x76   : > { %795 = vperm.xlu1 %2230, %v345_v22  }
  0x77   : > { %811 = vperm.xlu0 %2245, %v2489_v11  }
  0x7a   : > { %803 = vperm.xlu1 %2230, %v2484_v9   ;;  %v369_v9 = vld [vmem:[%s3109_s1] sm:$0x7] }
  0x7b   : > { %823 = vperm.xlu0 %2245, %v352_v31   ;;  %v2694_v22 = vrot.slane %v369_v9, %v892_v16 }
  0x7e   : > { %807 = vperm.xlu1 %2230, %v348_v29  }
  0x7f   : > { %831 = vperm.xlu0 %2245, %v2493_v12  }
  0x82   : > { %2231 = vset.pattern.permute.xlu1 %v2352_v2 }
  0x83   : > { %437 = vperm.xlu1 %2231, %v2511_v17   ;;  %843 = vperm.xlu0 %2245, %v2569_v32  }
  0x87   : > { %2232 = vset.pattern.permute.xlu1 %v2351_v1  ;;  %855 = vperm.xlu0 %2245, %v2575_v33  }
  0x88   : > { %615 = vperm.xlu1 %2232, %v2489_v11   ;;  %v696_v11 = vsub.s32 1, %v2665_v5 }
  0x8a   : > { %v2686_v15 = vrot.slane %v369_v9, %v696_v11  ;;  %v2728_v11 = vld [vmem:[%s3110_s2] ss:$0 sm:$0xff] }
  0x8b   : > { %863 = vperm.xlu0 %2245, %v2581_v34  }
  0x8c   : > { %2233 = vset.pattern.permute.xlu1 %v2352_v2 }
  0x8d   : > { %442 = vperm.xlu1 %2233, %v2518_v19  }
  0x8f   : > { %2253 = vset.pattern.permute.xlu0 %v2352_v2 }
  0x90   : > { %472 = vperm.xlu0 %2253, %v2569_v32  }
  0x91   : > { %447 = vperm.xlu1 %2233, %v352_v31  }
  0x94   : > { %497 = vperm.xlu0 %2253, %v2581_v34  }
  0x95   : > { %2234 = vset.pattern.permute.xlu1 %v2351_v1 }
  0x96   : > { %627 = vperm.xlu1 %2234, %v352_v31  }
  0x98   : > { %502 = vperm.xlu0 %2253, %v2591_v35  }
  0x9a   : > { %2235 = vset.pattern.permute.xlu1 %v2353_v10 }
  0x9b   : > { %815 = vperm.xlu1 %2235, %v2511_v17  }
  0x9c   : > { %v2599_v37 = vpop.permute.xlu1 %567  ;;  %v2601_v38 = vpop.permute.xlu0 %372  ;;  %512 = vperm.xlu0 %2253, %v2595_v36  }
  0x9d   : > { %v698_v27 = vmul.f32 %v2686_v15, %v2599_v37 }
  0x9f   : > { %819 = vperm.xlu1 %2235, %v2518_v19  }
  0xa0   : > { %v2605_v39 = vpop.permute.xlu1 %571  ;;  %v2607_v40 = vpop.permute.xlu0 %377  ;;  %2254 = vset.pattern.permute.xlu0 %v2351_v1 }
  0xa1   : > { %671 = vperm.xlu0 %2254, %v2591_v35  }
  0xa3   : > { %2236 = vset.pattern.permute.xlu1 %v2352_v2 }
  0xa4   : > { %452 = vperm.xlu1 %2236, %v353_v41   ;;  %v2616_v43 = vpop.permute.xlu0 %382 }
  0xa5   : > { %v2618_v44 = vpop.permute.xlu1 %387  ;;  %683 = vperm.xlu0 %2254, %v2613_v42  }
  0xa8   : > { %2237 = vset.pattern.permute.xlu1 %v2351_v1  ;;  %v2625_v46 = vpop.permute.xlu0 %392 }
  0xa9   : > { %631 = vperm.xlu1 %2237, %v353_v41   ;;  %687 = vperm.xlu0 %2254, %v2622_v45  }
  0xaa   : > { %v2628_v47 = vpop.permute.xlu1 %579 }
  0xab   : > { %v701_v31 = vmul.f32 %v2686_v15, %v2628_v47 }
  0xac   : > { %v2630_v48 = vpop.permute.xlu0 %417 }
  0xad   : > { %635 = vperm.xlu1 %2237, %v2493_v12   ;;  %2259 = vset.pattern.permute.xlu0 %v2353_v10 }
  0xae   : > { %875 = vperm.xlu0 %2259, %v2595_v36  }
  0xaf   : > { %v764_v49 = vpop.permute.xlu1 %763 }
  0xb0   : > { %v2636_v51 = vpop.permute.xlu0 %422 }
  0xb1   : > { %2239 = vset.pattern.permute.xlu1 %v2352_v2 }
  0xb2   : > { %467 = vperm.xlu1 %2239, %v356_v50   ;;  %887 = vperm.xlu0 %2259, %v2640_v52  }
  0xb3   : > { %v2643_v53 = vpop.permute.xlu1 %771 }
  0xb4   : > { %v2645_v54 = vpop.permute.xlu0 %432  ;;  %v896_v47 = vmul.f32 %v2694_v22, %v2643_v53 }
  0xb6   : > { %2240 = vset.pattern.permute.xlu1 %v2351_v1  ;;  %2262 = vset.pattern.permute.xlu0 %v2352_v2 }
  0xb7   : > { %643 = vperm.xlu1 %2240, %v356_v50   ;;  %v776_v55 = vpop.permute.xlu1 %775 }
  0xb8   : > { %v2649_v56 = vpop.permute.xlu0 %457 }
  0xbb   : > { %2241 = vset.pattern.permute.xlu1 %v2353_v10 }
  0xbc   : > { %827 = vperm.xlu1 %2241, %v353_v41   ;;  %v398_v57 = vpop.permute.xlu1 %397  ;;  %v463_v58 = vpop.permute.xlu0 %462 }
  0xc0   : > { %835 = vperm.xlu1 %2241, %v2498_v14   ;;  %v2683_v14 = vrot.slane %v369_v9, %v532_v8 }
  0xc1   : > { %v2653_v59 = vpop.permute.xlu1 %583  ;;  %v576_v60 = vpop.permute.xlu0 %575 }
  0xc2   : > { %v552_v17 = vmul.f32 %v2683_v14, %v463_v58  ;;  %v536_v21 = vmul.f32 %v2683_v14, %v2616_v43  ;;  %v700_v24 = vmul.f32 %v2686_v15, %v576_v60  ;;  %v534_v28 = vmul.f32 %v2683_v14, %v2601_v38 }
  0xc3   : > { %v535_v38 = vmul.f32 %v2683_v14, %v2607_v40  ;;  %v539_v40 = vmul.f32 %v2683_v14, %v398_v57  ;;  %v2740_v57 = vld [vmem:[%s2463_s27 + $0xc0] sm:$0xff] }
  0xc4   : > { %839 = vperm.xlu1 %2241, %v356_v50   ;;  %v732_v41 = vadd.f32 %v700_v24, %v536_v21  ;;  %v730_v43 = vadd.f32 %v698_v27, %v534_v28  ;;  %v537_v50 = vmul.f32 %v2683_v14, %v2618_v44 }
  0xc5   : > { %v588_v61 = vpop.permute.xlu0 %587 }
  0xc6   : > { %v2655_v62 = vpop.permute.xlu1 %402  ;;  %v703_v60 = vmul.f32 %v2686_v15, %v588_v61  ;;  %v733_v9 = vadd.f32 %v701_v31, %v537_v50 }
  0xc8   : > { %2242 = vset.pattern.permute.xlu1 %v2352_v2 }
  0xc9   : > { %477 = vperm.xlu1 %2242, %v2531_v23   ;;  %v592_v63 = vpop.permute.xlu0 %591 }
  0xca   : > { %v2659_v3 = vpop.permute.xlu1 %407  ;;  %v704_v21 = vmul.f32 %v2686_v15, %v592_v63 }
  0xcd   : > { %2243 = vset.pattern.permute.xlu1 %v2351_v1  ;;  %v2662_v4 = vpop.permute.xlu0 %607 }
  0xce   : > { %647 = vperm.xlu1 %2243, %v2569_v32   ;;  %v894_v32 = vmul.f32 %v2694_v22, %v764_v49  ;;  %v897_v49 = vmul.f32 %v2694_v22, %v776_v55  ;;  %v538_v55 = vmul.f32 %v2683_v14, %v2625_v46  ;;  %v540_v46 = vmul.f32 %v2683_v14, %v2655_v62 }
  0xcf   : > { %v2668_v6 = vpop.permute.xlu1 %595 }
  0xd0   : > { %v929_v61 = vadd.f32 %v897_v49, %v733_v9  ;;  %v705_v63 = vmul.f32 %v2686_v15, %v2668_v6 }
  0xd1   : > { %v2670_v7 = vpop.permute.xlu0 %619 }
  0xd2   : > { %2244 = vset.pattern.permute.xlu1 %v2352_v2 }
  0xd3   : > { %482 = vperm.xlu1 %2244, %v2539_v25  }
  0xd4   : > { %v784_v12 = vpop.permute.xlu1 %783 }
  0xd5   : > { %v2679_v13 = vpop.permute.xlu0 %623  ;;  %v899_v44 = vmul.f32 %v2694_v22, %v784_v12 }
  0xd7   : > { %487 = vperm.xlu1 %2244, %v2575_v33  }
  0xd8   : > { %v788_v18 = vpop.permute.xlu1 %787 }
  0xd9   : > { %v640_v19 = vpop.permute.xlu0 %639  ;;  %v900_v28 = vmul.f32 %v2694_v22, %v788_v18  ;;  %v541_v18 = vmul.f32 %v2683_v14, %v2659_v3 }
  0xda   : > { %v716_v20 = vmul.f32 %v2686_v15, %v640_v19  ;;  %v702_v19 = vmul.f32 %v2686_v15, %v2653_v59  ;;  %v968_v59 = vadd.f32 %v2728_v11, %v929_v61 }
  0xdb   : > { %2246 = vset.pattern.permute.xlu1 %v2351_v1 }
  0xdc   : > { %v2697_v26 = vadd.f32 %v716_v20, %v552_v17  ;;  %659 = vperm.xlu1 %2246, %v2575_v33   ;;  %v699_v33 = vmul.f32 %v2686_v15, %v2605_v39  ;;  %v926_v39 = vadd.f32 %v894_v32, %v730_v43  ;;  %v735_v20 = vadd.f32 %v703_v60, %v539_v40 }
  0xdd   : > { %v2704_v29 = vpop.permute.xlu1 %412  ;;  %v2706_v30 = vpop.permute.xlu0 %651  ;;  %v736_v43 = vadd.f32 %v704_v21, %v540_v46 }
  0xde   : > { %v731_v53 = vadd.f32 %v699_v33, %v535_v38  ;;  %v965_v12 = vadd.f32 %v2728_v11, %v926_v39  ;;  %v931_v27 = vadd.f32 %v899_v44, %v735_v20  ;;  %v543_v39 = vmul.f32 %v2683_v14, %v2630_v48 }
  0xdf   : > { %v932_v60 = vadd.f32 %v900_v28, %v736_v43  ;;  %v1000_v44 = vmax.f32 %v968_v59, 0.0  ;;  %v708_v59 = vmul.f32 %v2686_v15, %v2662_v4 }
  0xe0   : > { %2247 = vset.pattern.permute.xlu1 %v2353_v10  ;;  %v997_v50 = vmax.f32 %v965_v12, 0.0  ;;  %v970_v49 = vadd.f32 %v2728_v11, %v931_v27 }
  0xe1   : > { %847 = vperm.xlu1 %2247, %v2531_v23   ;;  %v2715_v37 = vpop.permute.xlu0 %655  ;;  %v928_v23 = vadd.f32 %v896_v47, %v732_v41  ;;  %v734_v41 = vadd.f32 %v702_v19, %v538_v55  ;;  %v971_v21 = vadd.f32 %v2728_v11, %v932_v60 }
  0xe2   : > { %v600_v58 = vpop.permute.xlu1 %599  ;;  %v1002_v20 = vmax.f32 %v970_v49, 0.0 }
  0xe3   : > { %v706_v12 = vmul.f32 %v2686_v15, %v600_v58  ;;  %v542_v58 = vmul.f32 %v2683_v14, %v2704_v29 }
  0xe5   : > { %851 = vperm.xlu1 %2247, %v2539_v25   ;;  %v967_v25 = vadd.f32 %v2728_v11, %v928_v23  ;;  %v737_v23 = vadd.f32 %v705_v63, %v541_v18  ;;  %v1003_v63 = vmax.f32 %v971_v21, 0.0 }
  0xe6   : > { %v604_v16 = vpop.permute.xlu1 %603  ;;  %v768_v17 = vpop.permute.xlu0 %767 }
  0xe7   : > { %v895_v24 = vmul.f32 %v2694_v22, %v768_v17  ;;  %v999_v47 = vmax.f32 %v967_v25, 0.0 }
  0xe9   : > { %v927_v31 = vadd.f32 %v895_v24, %v731_v53  ;;  %2248 = vset.pattern.permute.xlu1 %v2352_v2  ;;  %v707_v53 = vmul.f32 %v2686_v15, %v604_v16  ;;  %v1030_v19 = vpack.c.bf16 %v1000_v44, %v999_v47 }
  0xea   : > { %492 = vperm.xlu1 %2248, %v2740_v57   ;;  %v780_v32 = vpop.permute.xlu0 %779 }
  0xeb   : > { %v898_v33 = vmul.f32 %v2694_v22, %v780_v32  ;;  %v428_v38 = vpop.permute.xlu1 %427  ;;  %v966_v62 = vadd.f32 %v2728_v11, %v927_v31  ;;  %v739_v25 = vadd.f32 %v707_v53, %v543_v39  ;;  %v544_v31 = vmul.f32 %v2683_v14, %v2636_v51 }
  0xed   : > { %v930_v9 = vadd.f32 %v898_v33, %v734_v41  ;;  %v998_v6 = vmax.f32 %v966_v62, 0.0  ;;  %v364_v33 = vld [vmem:[%s2463_s27 + $0xd8] sm:$0xff]  ;;  %v738_v62 = vadd.f32 %v706_v12, %v542_v58 }
  0xee   : > { %2249 = vset.pattern.permute.xlu1 %v2351_v1  ;;  %v792_v40 = vpop.permute.xlu0 %791 }
  0xef   : > { %v969_v55 = vadd.f32 %v2728_v11, %v930_v9  ;;  %v901_v3 = vmul.f32 %v2694_v22, %v792_v40  ;;  %663 = vperm.xlu1 %2249, %v2740_v57   ;;  %v1029_v61 = vpack.c.bf16 %v998_v6, %v997_v50  ;;  %v740_v50 = vadd.f32 %v708_v59, %v544_v31 }
  0xf0   : > { %v612_v17 = vpop.permute.xlu1 %611  ;;  %v545_v9 = vmul.f32 %v2683_v14, %v428_v38  ;;  %v711_v59 = vmul.f32 %v2686_v15, %v2670_v7 }
  0xf1   : > { %v1001_v48 = vmax.f32 %v969_v55, 0.0  ;;  %v933_v24 = vadd.f32 %v901_v3, %v737_v23  ;;  %2045 = vmatprep.mubr.bf16.mxu0 %v1029_v61  ;;  %v709_v29 = vmul.f32 %v2686_v15, %v612_v17 }
  0xf2   : > { %2046 = vmatmul.mubr.bf16.vlgmr.msra.gmra.mrb[0].mxu0 %v1030_v19  ;;  %v800_v16 = vpop.permute.xlu0 %799 }
  0xf3   : > { %v972_v46 = vadd.f32 %v2728_v11, %v933_v24  ;;  %v903_v27 = vmul.f32 %v2694_v22, %v800_v16  ;;  %667 = vperm.xlu1 %2249, %v2581_v34   ;;  %v1031_v28 = vpack.c.bf16 %v1002_v20, %v1001_v48  ;;  %v741_v44 = vadd.f32 %v709_v29, %v545_v9 }
  0xf4   : > { %v546_v16 = vmul.f32 %v2683_v14, %v2645_v54 }
  0xf5   : > { %v1004_v32 = vmax.f32 %v972_v46, 0.0  ;;  %v935_v41 = vadd.f32 %v903_v27, %v739_v25  ;;  %v796_v43 = vpop.permute.xlu1 %795  ;;  %2049 = vmatprep.mubr.bf16.mxu0 %v1031_v28 }
  0xf6   : > { %v902_v18 = vmul.f32 %v2694_v22, %v796_v43  ;;  %v812_v25 = vpop.permute.xlu0 %811  ;;  %v712_v43 = vmul.f32 %v2686_v15, %v2679_v13 }
  0xf7   : > { %2250 = vset.pattern.permute.xlu1 %v2352_v2  ;;  %v1032_v34 = vpack.c.bf16 %v1004_v32, %v1003_v63  ;;  %v974_v51 = vadd.f32 %v2728_v11, %v935_v41  ;;  %v906_v46 = vmul.f32 %v2694_v22, %v812_v25 }
  0xf8   : > { %v934_v47 = vadd.f32 %v902_v18, %v738_v62  ;;  %507 = vperm.xlu1 %2250, %v364_v33  }
  0xf9   : > { %v804_v4 = vpop.permute.xlu1 %803  ;;  %v1006_v6 = vmax.f32 %v974_v51, 0.0 }
  0xfa   : > { %v973_v49 = vadd.f32 %v2728_v11, %v934_v47  ;;  %v904_v60 = vmul.f32 %v2694_v22, %v804_v4  ;;  %2050 = vmatmul.mubr.bf16.gmra.mrb[4].mxu0 %v1032_v34  ;;  %v824_v31 = vpop.permute.xlu0 %823 }
  0xfc   : > { %v1005_v39 = vmax.f32 %v973_v49, 0.0  ;;  %v936_v23 = vadd.f32 %v904_v60, %v740_v50  ;;  %2251 = vset.pattern.permute.xlu1 %v2351_v1 }
  0xfd   : > { %675 = vperm.xlu1 %2251, %v364_v33   ;;  %v808_v40 = vpop.permute.xlu1 %807 }
  0xfe   : > { %v905_v53 = vmul.f32 %v2694_v22, %v808_v40  ;;  %v1033_v55 = vpack.c.bf16 %v1006_v6, %v1005_v39  ;;  %v975_v3 = vadd.f32 %v2728_v11, %v936_v23 }
 0x100   : > { %v937_v61 = vadd.f32 %v905_v53, %v741_v44  ;;  %2053 = vmatprep.mubr.bf16.mxu0 %v1033_v55  ;;  %v1007_v19 = vmax.f32 %v975_v3, 0.0 }
 0x101   : > { %2252 = vset.pattern.permute.xlu1 %v2353_v10 }
 0x102   : > { %v976_v17 = vadd.f32 %v2728_v11, %v937_v61  ;;  %859 = vperm.xlu1 %2252, %v2740_v57   ;;  %v438_v38 = vpop.permute.xlu1 %437  ;;  %v832_v61 = vpop.permute.xlu0 %831 }
 0x103   : > { %v547_v58 = vmul.f32 %v2683_v14, %v438_v38  ;;  %v911_v38 = vmul.f32 %v2694_v22, %v832_v61 }
 0x104   : > { %v1008_v20 = vmax.f32 %v976_v17, 0.0  ;;  %v2273_v17 = vld [vmem:[%s3113_s5 + $0x10] sm:$0xff]  }
 0x106   : > { %867 = vperm.xlu1 %2252, %v2591_v35   ;;  %v1034_v21 = vpack.c.bf16 %v1008_v20, %v1007_v19  ;;  %v2274_v20 = vld [vmem:[%s3113_s5 + $0x18] sm:$0xff]  }
 0x107   : > { %v616_v48 = vpop.permute.xlu1 %615 }
 0x108   : > { %2054 = vmatmul.mubr.bf16.gmra.mrb[8].mxu0 %v1034_v21  ;;  %v710_v57 = vmul.f32 %v2686_v15, %v616_v48 }
 0x10a   : > { %871 = vperm.xlu1 %2252, %v364_v33   ;;  %v742_v35 = vadd.f32 %v710_v57, %v546_v16  ;;  %v743_v33 = vadd.f32 %v711_v59, %v547_v58 }
 0x10c   : > { %v443_v24 = vpop.permute.xlu1 %442  ;;  %v938_v63 = vadd.f32 %v906_v46, %v742_v35  ;;  %v2276_v46 = vld [vmem:[%s3113_s5 + $0x28] sm:$0xff]  }
 0x10d   : > { %v548_v62 = vmul.f32 %v2683_v14, %v443_v24  ;;  %v2275_v24 = vld [vmem:[%s3113_s5 + $0x20] sm:$0xff]  }
 0x10e   : > { %2255 = vset.pattern.permute.xlu1 %v2352_v2  ;;  %v977_v18 = vadd.f32 %v2728_v11, %v938_v63 }
 0x10f   : > { %517 = vperm.xlu1 %2255, %v2613_v42   ;;  %v744_v47 = vadd.f32 %v712_v43, %v548_v62 }
 0x110   : > { %v448_v12 = vpop.permute.xlu1 %447  ;;  %v1009_v49 = vmax.f32 %v977_v18, 0.0 }
 0x111   : > { %v549_v54 = vmul.f32 %v2683_v14, %v448_v12 }
 0x113   : > { %2256 = vset.pattern.permute.xlu1 %v2351_v1 }
 0x114   : > { %679 = vperm.xlu1 %2256, %v2595_v36   ;;  %v909_v36 = vmul.f32 %v2694_v22, %v824_v31 }
 0x115   : > { %v628_v27 = vpop.permute.xlu1 %627 }
 0x116   : > { %v713_v28 = vmul.f32 %v2686_v15, %v628_v27 }
 0x118   : > { %2257 = vset.pattern.permute.xlu1 %v2352_v2  ;;  %v745_v32 = vadd.f32 %v713_v28, %v549_v54 }
 0x119   : > { %522 = vperm.xlu1 %2257, %v2622_v45  }
 0x11a   : > { %v816_v41 = vpop.permute.xlu1 %815  ;;  %v941_v34 = vadd.f32 %v909_v36, %v745_v32  ;;  %v844_v36 = vpop.permute.xlu0 %843 }
 0x11b   : > { %v907_v7 = vmul.f32 %v2694_v22, %v816_v41 }
 0x11c   : > { %v980_v13 = vadd.f32 %v2728_v11, %v941_v34  ;;  %v2277_v34 = vld [vmem:[%s3113_s5 + $0x30] sm:$0xff]  }
 0x11d   : > { %v939_v50 = vadd.f32 %v907_v7, %v743_v33  ;;  %527 = vperm.xlu1 %2257, %v2640_v52  }
 0x11e   : > { %v820_v51 = vpop.permute.xlu1 %819  ;;  %v1012_v40 = vmax.f32 %v980_v13, 0.0 }
 0x11f   : > { %v978_v4 = vadd.f32 %v2728_v11, %v939_v50  ;;  %v908_v29 = vmul.f32 %v2694_v22, %v820_v51  ;;  %v856_v51 = vpop.permute.xlu0 %855 }
 0x121   : > { %v1010_v60 = vmax.f32 %v978_v4, 0.0  ;;  %v940_v9 = vadd.f32 %v908_v29, %v744_v47  ;;  %2258 = vset.pattern.permute.xlu1 %v2351_v1  ;;  %v2271_v1 = vld [vmem:[%s3113_s5] sm:$0xff]   ;;  %v2278_v29 = vld [vmem:[%s3113_s5 + $0x38] sm:$0xff]  }
 0x122   : > { %691 = vperm.xlu1 %2258, %v2640_v52   ;;  %2077 = vmatprep.subr.bf16.mxu1 %v2271_v1 }
 0x123   : > { %v979_v6 = vadd.f32 %v2728_v11, %v940_v9  ;;  %v453_v39 = vpop.permute.xlu1 %452  ;;  %v1035_v23 = vpack.c.bf16 %v1010_v60, %v1009_v49  ;;  %2078 = vmatpush3.bf16.msra.mxu1 %v2271_v1  ;;  %v864_v60 = vpop.permute.xlu0 %863 }
 0x124   : > { %v550_v48 = vmul.f32 %v2683_v14, %v453_v39 }
 0x125   : > { %v1011_v44 = vmax.f32 %v979_v6, 0.0  ;;  %2057 = vmatprep.mubr.bf16.mxu0 %v1035_v23 }
 0x126   : > { %2260 = vset.pattern.permute.xlu1 %v2353_v10  ;;  %v2272_v10 = vld [vmem:[%s3113_s5 + $0x8] sm:$0xff]  }
 0x127   : > { %879 = vperm.xlu1 %2260, %v2613_v42   ;;  %v1036_v53 = vpack.c.bf16 %v1012_v40, %v1011_v44  ;;  %2079 = vmatprep.subr.bf16.mxu1 %v2272_v10  ;;  %v473_v6 = vpop.permute.xlu0 %472  ;;  %v914_v44 = vmul.f32 %v2694_v22, %v844_v36 }
 0x128   : > { %v632_v55 = vpop.permute.xlu1 %631  ;;  %2080 = vmatpush3.bf16.msra.mxu1 %v2272_v10  ;;  %v554_v40 = vmul.f32 %v2683_v14, %v473_v6  ;;  %v719_v10 = vmul.f32 %v2686_v15, %v2706_v30 }
 0x129   : > { %2058 = vmatmul.mubr.bf16.gmra.mrb[12].mxu0 %v1036_v53  ;;  %2081 = vmatprep.subr.bf16.mxu1 %v2273_v17  ;;  %v714_v21 = vmul.f32 %v2686_v15, %v632_v55 }
 0x12b   : > { %883 = vperm.xlu1 %2260, %v2622_v45   ;;  %v551_v45 = vmul.f32 %v2683_v14, %v2649_v56  ;;  %v746_v16 = vadd.f32 %v714_v21, %v550_v48 }
 0x12c   : > { %v636_v3 = vpop.permute.xlu1 %635  ;;  %2082 = vmatpush3.bf16.msra.mxu1 %v2273_v17  ;;  %v917_v17 = vmul.f32 %v2694_v22, %v856_v51 }
 0x12d   : > { %v715_v42 = vmul.f32 %v2686_v15, %v636_v3  ;;  %2083 = vmatprep.subr.bf16.mxu1 %v2274_v20 }
 0x12f   : > { %2261 = vset.pattern.permute.xlu1 %v2352_v2  ;;  %v747_v2 = vadd.f32 %v715_v42, %v551_v45 }
 0x130   : > { %2084 = vmatpush3.bf16.msra.mxu1 %v2274_v20  ;;  %v720_v20 = vmul.f32 %v2686_v15, %v2715_v37 }
 0x131   : > { %v468_v52 = vpop.permute.xlu1 %467  ;;  %v943_v56 = vadd.f32 %v911_v38, %v747_v2  ;;  %2085 = vmatprep.subr.bf16.mxu1 %v2275_v24 }
 0x132   : > { %v553_v54 = vmul.f32 %v2683_v14, %v468_v52 }
 0x133   : > { %v982_v25 = vadd.f32 %v2728_v11, %v943_v56 }
 0x134   : > { %2086 = vmatpush3.bf16.msra.mxu1 %v2275_v24 }
 0x135   : > { %v1014_v58 = vmax.f32 %v982_v25, 0.0  ;;  %2087 = vmatprep.subr.bf16.mxu1 %v2276_v46 }
 0x136   : > { %v644_v19 = vpop.permute.xlu1 %643 }
 0x137   : > { %v717_v28 = vmul.f32 %v2686_v15, %v644_v19 }
 0x138   : > { %2088 = vmatpush3.bf16.msra.mxu1 %v2276_v46 }
 0x139   : > { %v749_v43 = vadd.f32 %v717_v28, %v553_v54  ;;  %2089 = vmatprep.subr.bf16.mxu1 %v2277_v34  ;;  %v498_v54 = vpop.permute.xlu0 %497 }
 0x13b   : > { %v828_v12 = vpop.permute.xlu1 %827 }
 0x13c   : > { %v910_v57 = vmul.f32 %v2694_v22, %v828_v12  ;;  %2090 = vmatpush3.bf16.msra.mxu1 %v2277_v34 }
 0x13d   : > { %2091 = vmatprep.subr.bf16.mxu1 %v2278_v29 }
 0x13e   : > { %v942_v35 = vadd.f32 %v910_v57, %v746_v16 }
 0x13f   : > { %v836_v27 = vpop.permute.xlu1 %835 }
 0x140   : > { %v981_v31 = vadd.f32 %v2728_v11, %v942_v35  ;;  %v912_v59 = vmul.f32 %v2694_v22, %v836_v27  ;;  %2092 = vmatpush3.bf16.msra.mxu1 %v2278_v29 }
 0x142   : > { %v1013_v63 = vmax.f32 %v981_v31, 0.0  ;;  %v944_v32 = vadd.f32 %v912_v59, %v2697_v26 }
 0x143   : > { %v840_v41 = vpop.permute.xlu1 %839 }
 0x144   : > { %v913_v33 = vmul.f32 %v2694_v22, %v840_v41  ;;  %v1037_v62 = vpack.c.bf16 %v1014_v58, %v1013_v63  ;;  %v983_v7 = vadd.f32 %v2728_v11, %v944_v32  ;;  %v503_v32 = vpop.permute.xlu0 %502 }
 0x146   : > { %v945_v18 = vadd.f32 %v913_v33, %v749_v43  ;;  %2061 = vmatprep.mubr.bf16.mxu0 %v1037_v62  ;;  %v1015_v47 = vmax.f32 %v983_v7, 0.0  ;;  %v559_v62 = vmul.f32 %v2683_v14, %v498_v54 }
 0x148   : > { %v984_v50 = vadd.f32 %v2728_v11, %v945_v18  ;;  %v478_v26 = vpop.permute.xlu1 %477  ;;  %v513_v43 = vpop.permute.xlu0 %512 }
 0x149   : > { %v555_v1 = vmul.f32 %v2683_v14, %v478_v26 }
 0x14a   : > { %v1016_v4 = vmax.f32 %v984_v50, 0.0  ;;  %v919_v50 = vmul.f32 %v2694_v22, %v864_v60 }
 0x14b   : > { %v751_v2 = vadd.f32 %v719_v10, %v555_v1 }
 0x14c   : > { %v1038_v49 = vpack.c.bf16 %v1016_v4, %v1015_v47  ;;  %v672_v34 = vpop.permute.xlu0 %671  ;;  %v560_v4 = vmul.f32 %v2683_v14, %v503_v32 }
 0x14d   : > { %v648_v13 = vpop.permute.xlu1 %647  ;;  %v724_v29 = vmul.f32 %v2686_v15, %v672_v34 }
 0x14e   : > { %2062 = vmatmul.mubr.bf16.gmra.mrb[16].mxu0 %v1038_v49  ;;  %v718_v23 = vmul.f32 %v2686_v15, %v648_v13 }
 0x150   : > { %v750_v53 = vadd.f32 %v718_v23, %v554_v40 }
 0x152   : > { %v483_v9 = vpop.permute.xlu1 %482  ;;  %v946_v42 = vadd.f32 %v914_v44, %v750_v53 }
 0x153   : > { %v556_v38 = vmul.f32 %v2683_v14, %v483_v9 }
 0x154   : > { %v985_v56 = vadd.f32 %v2728_v11, %v946_v42 }
 0x155   : > { %v752_v12 = vadd.f32 %v720_v20, %v556_v38 }
 0x156   : > { %v488_v39 = vpop.permute.xlu1 %487  ;;  %v1017_v35 = vmax.f32 %v985_v56, 0.0 }
 0x157   : > { %v557_v52 = vmul.f32 %v2683_v14, %v488_v39  ;;  %v756_v39 = vadd.f32 %v724_v29, %v560_v4 }
 0x15b   : > { %v660_v55 = vpop.permute.xlu1 %659 }
 0x15c   : > { %v721_v3 = vmul.f32 %v2686_v15, %v660_v55 }
 0x15e   : > { %v753_v61 = vadd.f32 %v721_v3, %v557_v52 }
 0x160   : > { %v848_v45 = vpop.permute.xlu1 %847  ;;  %v949_v21 = vadd.f32 %v917_v17, %v753_v61 }
 0x161   : > { %v915_v19 = vmul.f32 %v2694_v22, %v848_v45 }
 0x162   : > { %v988_v46 = vadd.f32 %v2728_v11, %v949_v21 }
 0x163   : > { %v947_v48 = vadd.f32 %v915_v19, %v751_v2 }
 0x164   : > { %v852_v24 = vpop.permute.xlu1 %851  ;;  %v1020_v59 = vmax.f32 %v988_v46, 0.0 }
 0x165   : > { %v986_v30 = vadd.f32 %v2728_v11, %v947_v48  ;;  %v916_v16 = vmul.f32 %v2694_v22, %v852_v24  ;;  %v684_v48 = vpop.permute.xlu0 %683 }
 0x167   : > { %v1018_v57 = vmax.f32 %v986_v30, 0.0  ;;  %v948_v25 = vadd.f32 %v916_v16, %v752_v12 }
 0x169   : > { %v987_v27 = vadd.f32 %v2728_v11, %v948_v25  ;;  %v493_v28 = vpop.permute.xlu1 %492  ;;  %v1039_v31 = vpack.c.bf16 %v1018_v57, %v1017_v35  ;;  %v688_v12 = vpop.permute.xlu0 %687  ;;  %v562_v35 = vmul.f32 %v2683_v14, %v513_v43 }
 0x16a   : > { %v558_v26 = vmul.f32 %v2683_v14, %v493_v28  ;;  %v728_v43 = vmul.f32 %v2686_v15, %v688_v12 }
 0x16b   : > { %v1019_v37 = vmax.f32 %v987_v27, 0.0  ;;  %2065 = vmatprep.mubr.bf16.mxu0 %v1039_v31 }
 0x16d   : > { %v1040_v58 = vpack.c.bf16 %v1020_v59, %v1019_v37  ;;  %v876_v25 = vpop.permute.xlu0 %875  ;;  %v727_v59 = vmul.f32 %v2686_v15, %v684_v48 }
 0x16e   : > { %v664_v63 = vpop.permute.xlu1 %663  ;;  %v922_v27 = vmul.f32 %v2694_v22, %v876_v25 }
 0x16f   : > { %2066 = vmatmul.mubr.bf16.gmra.mrb[20].mxu0 %v1040_v58  ;;  %v722_v51 = vmul.f32 %v2686_v15, %v664_v63 }
 0x171   : > { %v754_v13 = vadd.f32 %v722_v51, %v558_v26  ;;  %v888_v37 = vpop.permute.xlu0 %887 }
 0x172   : > { %v668_v36 = vpop.permute.xlu1 %667 }
 0x173   : > { %v723_v33 = vmul.f32 %v2686_v15, %v668_v36  ;;  %v925_v36 = vmul.f32 %v2694_v22, %v888_v37 }
 0x175   : > { %v755_v7 = vadd.f32 %v723_v33, %v559_v62 }
 0x177   : > { %v508_v41 = vpop.permute.xlu1 %507  ;;  %v951_v47 = vadd.f32 %v919_v50, %v755_v7 }
 0x178   : > { %v561_v55 = vmul.f32 %v2683_v14, %v508_v41 }
 0x179   : > { %v990_v23 = vadd.f32 %v2728_v11, %v951_v47 }
 0x17b   : > { %v1022_v52 = vmax.f32 %v990_v23, 0.0 }
 0x17c   : > { %v676_v18 = vpop.permute.xlu1 %675 }
 0x17d   : > { %v725_v60 = vmul.f32 %v2686_v15, %v676_v18 }
 0x17f   : > { %v757_v42 = vadd.f32 %v725_v60, %v561_v55 }
 0x181   : > { %v860_v49 = vpop.permute.xlu1 %859 }
 0x182   : > { %v918_v9 = vmul.f32 %v2694_v22, %v860_v49 }
 0x184   : > { %v950_v6 = vadd.f32 %v918_v9, %v754_v13 }
 0x185   : > { %v868_v40 = vpop.permute.xlu1 %867 }
 0x186   : > { %v989_v44 = vadd.f32 %v2728_v11, %v950_v6  ;;  %v920_v53 = vmul.f32 %v2694_v22, %v868_v40  ;;  %v2915_v40 = vld [vmem:[%s3112_s4] ss:$0 sm:$0xff] }
 0x188   : > { %v1021_v3 = vmax.f32 %v989_v44, 0.0  ;;  %v952_v1 = vadd.f32 %v920_v53, %v756_v39 }
 0x189   : > { %v872_v10 = vpop.permute.xlu1 %871 }
 0x18a   : > { %v921_v61 = vmul.f32 %v2694_v22, %v872_v10  ;;  %v1041_v45 = vpack.c.bf16 %v1022_v52, %v1021_v3  ;;  %v991_v17 = vadd.f32 %v2728_v11, %v952_v1 }
 0x18c   : > { %v953_v2 = vadd.f32 %v921_v61, %v757_v42  ;;  %2069 = vmatprep.mubr.bf16.mxu0 %v1041_v45  ;;  %v1023_v20 = vmax.f32 %v991_v17, 0.0 }
 0x18e   : > { %v992_v38 = vadd.f32 %v2728_v11, %v953_v2  ;;  %v518_v19 = vpop.permute.xlu1 %517 }
 0x18f   : > { %v563_v58 = vmul.f32 %v2683_v14, %v518_v19 }
 0x190   : > { %v1024_v21 = vmax.f32 %v992_v38, 0.0 }
 0x191   : > { %v759_v33 = vadd.f32 %v727_v59, %v563_v58 }
 0x192   : > { %v1042_v56 = vpack.c.bf16 %v1024_v21, %v1023_v20 }
 0x193   : > { %v680_v24 = vpop.permute.xlu1 %679 }
 0x194   : > { %2070 = vmatmul.mubr.bf16.gmra.mrb[24].mxu0 %v1042_v56  ;;  %v726_v57 = vmul.f32 %v2686_v15, %v680_v24 }
 0x196   : > { %v758_v46 = vadd.f32 %v726_v57, %v562_v35 }
 0x198   : > { %v523_v30 = vpop.permute.xlu1 %522  ;;  %v954_v63 = vadd.f32 %v922_v27, %v758_v46 }
 0x199   : > { %v564_v62 = vmul.f32 %v2683_v14, %v523_v30 }
 0x19a   : > { %v993_v18 = vadd.f32 %v2728_v11, %v954_v63 }
 0x19b   : > { %v760_v26 = vadd.f32 %v728_v43, %v564_v62 }
 0x19c   : > { %v528_v16 = vpop.permute.xlu1 %527  ;;  %v1025_v29 = vmax.f32 %v993_v18, 0.0 }
 0x19d   : > { %v565_v54 = vmul.f32 %v2683_v14, %v528_v16 }
 0x1a1   : > { %v692_v28 = vpop.permute.xlu1 %691 }
 0x1a2   : > { %v729_v31 = vmul.f32 %v2686_v15, %v692_v28 }
 0x1a4   : > { %v761_v32 = vadd.f32 %v729_v31, %v565_v54 }
 0x1a6   : > { %v880_v41 = vpop.permute.xlu1 %879  ;;  %v957_v34 = vadd.f32 %v925_v36, %v761_v32 }
 0x1a7   : > { %v923_v7 = vmul.f32 %v2694_v22, %v880_v41 }
 0x1a8   : > { %v996_v49 = vadd.f32 %v2728_v11, %v957_v34 }
 0x1a9   : > { %v955_v50 = vadd.f32 %v923_v7, %v759_v33 }
 0x1aa   : > { %v884_v51 = vpop.permute.xlu1 %883  ;;  %v1028_v6 = vmax.f32 %v996_v49, 0.0 }
 0x1ab   : > { %v994_v47 = vadd.f32 %v2728_v11, %v955_v50  ;;  %v924_v4 = vmul.f32 %v2694_v22, %v884_v51 }
 0x1ad   : > { %v1026_v13 = vmax.f32 %v994_v47, 0.0  ;;  %v956_v9 = vadd.f32 %v924_v4, %v760_v26 }
 0x1af   : > { %v995_v15 = vadd.f32 %v2728_v11, %v956_v9  ;;  %v1043_v14 = vpack.c.bf16 %v1026_v13, %v1025_v29 }
 0x1b1   : > { %v1027_v39 = vmax.f32 %v995_v15, 0.0  ;;  %2073 = vmatprep.mubr.bf16.mxu0 %v1043_v14 }
 0x1b3   : > { %v1044_v23 = vpack.c.bf16 %v1028_v6, %v1027_v39 }
 0x1b5   : > { %2074 = vmatmul.mubr.bf16.gmra.mrb[28].mxu0 %v1044_v23 }
 0x1c5   : > { %v2047_v60 = vpop.f32.mrb[0].mxu0 }
 0x1c6   : > { %v1159_v22 = vadd.f32 %v2047_v60, %v2915_v40  ;;  %v1150_v44 = vpop.f32.mrb[1].mxu0 }
 0x1c7   : > { %v1151_v53 = vadd.f32 %v2915_v40, %v1150_v44  ;;  %v2048_v55 = vpop.f32.mrb[2].mxu0 }
 0x1c8   : > { %v1162_v11 = vadd.f32 %v2048_v55, %v2915_v40  ;;  %v1153_v3 = vpop.f32.mrb[3].mxu0  ;;  %v1279_v52 = vmax.f32 %v1159_v22, 0.0 }
 0x1c9   : > { %v1154_v1 = vadd.f32 %v2915_v40, %v1153_v3  ;;  %v1277_v42 = vmax.f32 %v1151_v53, 0.0 }
 0x1ca   : > { %v1280_v10 = vmax.f32 %v1162_v11, 0.0 }
 0x1cb   : > { %v1278_v61 = vmax.f32 %v1154_v1, 0.0 }
 0x1cc   : > { %v1310_v45 = vpack.c.bf16 %v1280_v10, %v1279_v52 }
 0x1cd   : > { %v2051_v17 = vpop.f32.mrb[4].mxu0  ;;  %v1309_v2 = vpack.c.bf16 %v1278_v61, %v1277_v42 }
 0x1ce   : > { %v1175_v38 = vadd.f32 %v2051_v17, %v2915_v40  ;;  %v1166_v19 = vpop.f32.mrb[5].mxu0 }
 0x1cf   : > { %v1167_v20 = vadd.f32 %v2915_v40, %v1166_v19  ;;  %v2052_v21 = vpop.f32.mrb[6].mxu0  ;;  %2093 = vmatprep.mubr.bf16.mxu1 %v1309_v2 }
 0x1d0   : > { %v1178_v48 = vadd.f32 %v2052_v21, %v2915_v40  ;;  %v1169_v56 = vpop.f32.mrb[7].mxu0  ;;  %2094 = vmatmul.mubr.bf16.vlgmr.msra.gmra.mrb[0].mxu1 %v1310_v45  ;;  %v1283_v12 = vmax.f32 %v1175_v38, 0.0 }
 0x1d1   : > { %v1170_v24 = vadd.f32 %v2915_v40, %v1169_v56  ;;  %v1281_v16 = vmax.f32 %v1167_v20, 0.0 }
 0x1d2   : > { %v1284_v30 = vmax.f32 %v1178_v48, 0.0 }
 0x1d3   : > { %v1282_v57 = vmax.f32 %v1170_v24, 0.0 }
 0x1d4   : > { %v1312_v25 = vpack.c.bf16 %v1284_v30, %v1283_v12 }
 0x1d5   : > { %v1311_v35 = vpack.c.bf16 %v1282_v57, %v1281_v16 }
 0x1d7   : > { %2097 = vmatprep.mubr.bf16.mxu1 %v1311_v35 }
 0x1d8   : > { %2098 = vmatmul.mubr.bf16.gmra.mrb[4].mxu1 %v1312_v25 }
 0x1db   : > { %v2055_v46 = vpop.f32.mrb[8].mxu0 }
 0x1dc   : > { %v1191_v27 = vadd.f32 %v2055_v46, %v2915_v40  ;;  %v1182_v28 = vpop.f32.mrb[9].mxu0 }
 0x1dd   : > { %v1183_v31 = vadd.f32 %v2915_v40, %v1182_v28  ;;  %v2056_v37 = vpop.f32.mrb[10].mxu0 }
 0x1de   : > { %v1194_v59 = vadd.f32 %v2056_v37, %v2915_v40  ;;  %v1185_v58 = vpop.f32.mrb[11].mxu0  ;;  %v1287_v63 = vmax.f32 %v1191_v27, 0.0 }
 0x1df   : > { %v1186_v54 = vadd.f32 %v2915_v40, %v1185_v58  ;;  %v1285_v36 = vmax.f32 %v1183_v31, 0.0 }
 0x1e0   : > { %v1288_v32 = vmax.f32 %v1194_v59, 0.0 }
 0x1e1   : > { %v1286_v41 = vmax.f32 %v1186_v54, 0.0 }
 0x1e2   : > { %v1314_v33 = vpack.c.bf16 %v1288_v32, %v1287_v63 }
 0x1e3   : > { %v1313_v43 = vpack.c.bf16 %v1286_v41, %v1285_v36 }
 0x1e5   : > { %2101 = vmatprep.mubr.bf16.mxu1 %v1313_v43 }
 0x1e6   : > { %2102 = vmatmul.mubr.bf16.gmra.mrb[8].mxu1 %v1314_v33 }
 0x1fc   : > { %v2059_v62 = vpop.f32.mrb[12].mxu0 }
 0x1fd   : > { %v1207_v7 = vadd.f32 %v2059_v62, %v2915_v40  ;;  %v1198_v18 = vpop.f32.mrb[13].mxu0 }
 0x1fe   : > { %v1199_v34 = vadd.f32 %v2915_v40, %v1198_v18  ;;  %v2060_v50 = vpop.f32.mrb[14].mxu0 }
 0x1ff   : > { %v1210_v51 = vadd.f32 %v2060_v50, %v2915_v40  ;;  %v1201_v26 = vpop.f32.mrb[15].mxu0  ;;  %v1291_v4 = vmax.f32 %v1207_v7, 0.0 }
 0x200   : > { %v1202_v47 = vadd.f32 %v2915_v40, %v1201_v26  ;;  %v1289_v49 = vmax.f32 %v1199_v34, 0.0 }
 0x201   : > { %v1292_v29 = vmax.f32 %v1210_v51, 0.0 }
 0x202   : > { %v1290_v13 = vmax.f32 %v1202_v47, 0.0 }
 0x203   : > { %v1316_v9 = vpack.c.bf16 %v1292_v29, %v1291_v4 }
 0x204   : > { %v1315_v15 = vpack.c.bf16 %v1290_v13, %v1289_v49  ;;  %v2952_v49 = vld [vmem:[%s3114_s6] ss:$0 sm:$0xff] }
 0x206   : > { %2105 = vmatprep.mubr.bf16.mxu1 %v1315_v15 }
 0x207   : > { %2106 = vmatmul.mubr.bf16.gmra.mrb[12].mxu1 %v1316_v9 }
 0x221   : > { %v2063_v14 = vpop.f32.mrb[16].mxu0 }
 0x222   : > { %v1223_v6 = vadd.f32 %v2063_v14, %v2915_v40  ;;  %v1214_v39 = vpop.f32.mrb[17].mxu0 }
 0x223   : > { %v1215_v23 = vadd.f32 %v2915_v40, %v1214_v39  ;;  %v2064_v60 = vpop.f32.mrb[18].mxu0 }
 0x224   : > { %v1226_v22 = vadd.f32 %v2064_v60, %v2915_v40  ;;  %v1217_v44 = vpop.f32.mrb[19].mxu0  ;;  %v1295_v55 = vmax.f32 %v1223_v6, 0.0 }
 0x225   : > { %v1218_v53 = vadd.f32 %v2915_v40, %v1217_v44  ;;  %v1293_v3 = vmax.f32 %v1215_v23, 0.0 }
 0x226   : > { %v1296_v11 = vmax.f32 %v1226_v22, 0.0 }
 0x227   : > { %v1294_v1 = vmax.f32 %v1218_v53, 0.0 }
 0x228   : > { %v1318_v52 = vpack.c.bf16 %v1296_v11, %v1295_v55 }
 0x229   : > { %v1317_v10 = vpack.c.bf16 %v1294_v1, %v1293_v3 }
 0x22b   : > { %2109 = vmatprep.mubr.bf16.mxu1 %v1317_v10 }
 0x22c   : > { %2110 = vmatmul.mubr.bf16.gmra.mrb[16].mxu1 %v1318_v52 }
 0x242   : > { %v2067_v42 = vpop.f32.mrb[20].mxu0 }
 0x243   : > { %v1239_v61 = vadd.f32 %v2067_v42, %v2915_v40  ;;  %v1230_v45 = vpop.f32.mrb[21].mxu0 }
 0x244   : > { %v1231_v17 = vadd.f32 %v2915_v40, %v1230_v45  ;;  %v2068_v2 = vpop.f32.mrb[22].mxu0 }
 0x245   : > { %v1242_v38 = vadd.f32 %v2068_v2, %v2915_v40  ;;  %v1233_v19 = vpop.f32.mrb[23].mxu0  ;;  %v1299_v21 = vmax.f32 %v1239_v61, 0.0 }
 0x246   : > { %v1234_v20 = vadd.f32 %v2915_v40, %v1233_v19  ;;  %v1297_v56 = vmax.f32 %v1231_v17, 0.0 }
 0x247   : > { %v1300_v48 = vmax.f32 %v1242_v38, 0.0 }
 0x248   : > { %v1298_v24 = vmax.f32 %v1234_v20, 0.0 }
 0x249   : > { %v1320_v12 = vpack.c.bf16 %v1300_v48, %v1299_v21 }
 0x24a   : > { %v1319_v30 = vpack.c.bf16 %v1298_v24, %v1297_v56 }
 0x24c   : > { %2113 = vmatprep.mubr.bf16.mxu1 %v1319_v30 }
 0x24d   : > { %2114 = vmatmul.mubr.bf16.gmra.mrb[20].mxu1 %v1320_v12 }
 0x267   : > { %v2071_v16 = vpop.f32.mrb[24].mxu0 }
 0x268   : > { %v1255_v57 = vadd.f32 %v2071_v16, %v2915_v40  ;;  %v1246_v25 = vpop.f32.mrb[25].mxu0 }
 0x269   : > { %v1247_v35 = vadd.f32 %v2915_v40, %v1246_v25  ;;  %v2072_v46 = vpop.f32.mrb[26].mxu0 }
 0x26a   : > { %v1258_v27 = vadd.f32 %v2072_v46, %v2915_v40  ;;  %v1249_v28 = vpop.f32.mrb[27].mxu0  ;;  %v1303_v37 = vmax.f32 %v1255_v57, 0.0 }
 0x26b   : > { %v1250_v31 = vadd.f32 %v2915_v40, %v1249_v28  ;;  %v1301_v58 = vmax.f32 %v1247_v35, 0.0 }
 0x26c   : > { %v1304_v59 = vmax.f32 %v1258_v27, 0.0 }
 0x26d   : > { %v1302_v54 = vmax.f32 %v1250_v31, 0.0 }
 0x26e   : > { %v1322_v63 = vpack.c.bf16 %v1304_v59, %v1303_v37 }
 0x26f   : > { %v1321_v32 = vpack.c.bf16 %v1302_v54, %v1301_v58 }
 0x271   : > { %2117 = vmatprep.mubr.bf16.mxu1 %v1321_v32 }
 0x272   : > { %2118 = vmatmul.mubr.bf16.gmra.mrb[24].mxu1 %v1322_v63 }
 0x288   : > { %v2075_v36 = vpop.f32.mrb[28].mxu0 }
 0x289   : > { %v1271_v41 = vadd.f32 %v2075_v36, %v2915_v40  ;;  %v1262_v33 = vpop.f32.mrb[29].mxu0 }
 0x28a   : > { %v1263_v43 = vadd.f32 %v2915_v40, %v1262_v33  ;;  %v2076_v62 = vpop.f32.mrb[30].mxu0 }
 0x28b   : > { %v1274_v7 = vadd.f32 %v2076_v62, %v2915_v40  ;;  %v1265_v18 = vpop.f32.mrb[31].mxu0  ;;  %v1307_v50 = vmax.f32 %v1271_v41, 0.0 }
 0x28c   : > { %v1266_v34 = vadd.f32 %v2915_v40, %v1265_v18  ;;  %v1305_v26 = vmax.f32 %v1263_v43, 0.0 }
 0x28d   : > { %v1308_v51 = vmax.f32 %v1274_v7, 0.0 }
 0x28e   : > { %v1306_v47 = vmax.f32 %v1266_v34, 0.0 }
 0x28f   : > { %v1324_v4 = vpack.c.bf16 %v1308_v51, %v1307_v50 }
 0x290   : > { %v1323_v29 = vpack.c.bf16 %v1306_v47, %v1305_v26  ;;  %v2989_v26 = vld [vmem:[%s3115_s7] sm:$0x1] }
 0x291   : > { %2027 = vmatprep.mubr.msk.f32.mxu0 %vm1600_vm0, %v2989_v26 }
 0x292   : > { %2121 = vmatprep.mubr.bf16.mxu1 %v1323_v29 }
 0x293   : > { %2122 = vmatmul.mubr.bf16.gmra.mrb[28].mxu1 %v1324_v4 }
 0x2a3   : > { %v2095_v13 = vpop.f32.mrb[0].mxu1 }
 0x2a4   : > { %v1439_v9 = vadd.f32 %v2095_v13, %v2952_v49  ;;  %v1430_v15 = vpop.f32.mrb[1].mxu1  ;;  %v1590_v13 = vld [vmem:[#allocation2] sm:$0x1] }
 0x2a5   : > { %v1431_v14 = vadd.f32 %v2952_v49, %v1430_v15  ;;  %v2096_v40 = vpop.f32.mrb[2].mxu1  ;;  %1593 = vperm.xlu1 %2261, %v1590_v13  }
 0x2a6   : > { %v1442_v6 = vadd.f32 %v2096_v40, %v2952_v49  ;;  %v1433_v39 = vpop.f32.mrb[3].mxu1  ;;  %v1559_v60 = vmax.f32 %v1439_v9, 0.0 }
 0x2a7   : > { %v1434_v23 = vadd.f32 %v2952_v49, %v1433_v39  ;;  %v1557_v44 = vmax.f32 %v1431_v14, 0.0 }
 0x2a8   : > { %v1560_v22 = vmax.f32 %v1442_v6, 0.0 }
 0x2a9   : > { %v1558_v53 = vmax.f32 %v1434_v23, 0.0 }
 0x2aa   : > { %v2958_v55 = vpack.c.bf16 %v1560_v22, %v1559_v60 }
 0x2ab   : > { %v2960_v11 = vpack.c.bf16 %v1558_v53, %v1557_v44  ;;  %v2099_v3 = vpop.f32.mrb[4].mxu1 }
 0x2ac   : > { %v1455_v1 = vadd.f32 %v2099_v3, %v2952_v49  ;;  %v1446_v52 = vpop.f32.mrb[5].mxu1 }
 0x2ad   : > { %v1447_v10 = vadd.f32 %v2952_v49, %v1446_v52  ;;  %v2100_v42 = vpop.f32.mrb[6].mxu1 }
 0x2ae   : > { %v1458_v61 = vadd.f32 %v2100_v42, %v2952_v49  ;;  %v1449_v45 = vpop.f32.mrb[7].mxu1  ;;  %v1563_v2 = vmax.f32 %v1455_v1, 0.0 }
 0x2af   : > { %v1450_v17 = vadd.f32 %v2952_v49, %v1449_v45  ;;  %v1561_v19 = vmax.f32 %v1447_v10, 0.0 }
 0x2b0   : > { %v1564_v38 = vmax.f32 %v1458_v61, 0.0 }
 0x2b1   : > { %v1562_v20 = vmax.f32 %v1450_v17, 0.0 }
 0x2b2   : > { %v2966_v21 = vpack.c.bf16 %v1564_v38, %v1563_v2 }
 0x2b3   : > { %v2968_v48 = vpack.c.bf16 %v1562_v20, %v1561_v19 }
 0x2b9   : > { %v2103_v56 = vpop.f32.mrb[8].mxu1 }
 0x2ba   : > { %v1471_v24 = vadd.f32 %v2103_v56, %v2952_v49  ;;  %v1462_v12 = vpop.f32.mrb[9].mxu1 }
 0x2bb   : > { %v1463_v30 = vadd.f32 %v2952_v49, %v1462_v12  ;;  %v2104_v16 = vpop.f32.mrb[10].mxu1 }
 0x2bc   : > { %v1474_v57 = vadd.f32 %v2104_v16, %v2952_v49  ;;  %v1465_v25 = vpop.f32.mrb[11].mxu1  ;;  %v1567_v46 = vmax.f32 %v1471_v24, 0.0 }
 0x2bd   : > { %v1466_v35 = vadd.f32 %v2952_v49, %v1465_v25  ;;  %v1565_v28 = vmax.f32 %v1463_v30, 0.0 }
 0x2be   : > { %v1568_v27 = vmax.f32 %v1474_v57, 0.0 }
 0x2bf   : > { %v1566_v31 = vmax.f32 %v1466_v35, 0.0 }
 0x2c0   : > { %v2974_v37 = vpack.c.bf16 %v1568_v27, %v1567_v46 }
 0x2c1   : > { %v2976_v59 = vpack.c.bf16 %v1566_v31, %v1565_v28 }
 0x2da   : > { %v2107_v58 = vpop.f32.mrb[12].mxu1 }
 0x2db   : > { %v1487_v54 = vadd.f32 %v2107_v58, %v2952_v49  ;;  %v1478_v63 = vpop.f32.mrb[13].mxu1 }
 0x2dc   : > { %v1479_v32 = vadd.f32 %v2952_v49, %v1478_v63  ;;  %v2108_v36 = vpop.f32.mrb[14].mxu1 }
 0x2dd   : > { %v1490_v41 = vadd.f32 %v2108_v36, %v2952_v49  ;;  %v1481_v33 = vpop.f32.mrb[15].mxu1  ;;  %v1571_v62 = vmax.f32 %v1487_v54, 0.0 }
 0x2de   : > { %v1482_v43 = vadd.f32 %v2952_v49, %v1481_v33  ;;  %v1569_v18 = vmax.f32 %v1479_v32, 0.0 }
 0x2df   : > { %v1572_v7 = vmax.f32 %v1490_v41, 0.0 }
 0x2e0   : > { %v1570_v34 = vmax.f32 %v1482_v43, 0.0 }
 0x2e1   : > { %v2982_v50 = vpack.c.bf16 %v1572_v7, %v1571_v62 }
 0x2e2   : > { %v2984_v51 = vpack.c.bf16 %v1570_v34, %v1569_v18 }
 0x2ff   : > { %v2111_v47 = vpop.f32.mrb[16].mxu1 }
 0x300   : > { %v1503_v4 = vadd.f32 %v2111_v47, %v2952_v49  ;;  %v1494_v29 = vpop.f32.mrb[17].mxu1 }
 0x301   : > { %v1495_v9 = vadd.f32 %v2952_v49, %v1494_v29  ;;  %v2112_v15 = vpop.f32.mrb[18].mxu1 }
 0x302   : > { %v1506_v14 = vadd.f32 %v2112_v15, %v2952_v49  ;;  %v1497_v40 = vpop.f32.mrb[19].mxu1  ;;  %v1575_v39 = vmax.f32 %v1503_v4, 0.0 }
 0x303   : > { %v1498_v6 = vadd.f32 %v2952_v49, %v1497_v40  ;;  %v1573_v60 = vmax.f32 %v1495_v9, 0.0 }
 0x304   : > { %v1576_v23 = vmax.f32 %v1506_v14, 0.0 }
 0x305   : > { %v1574_v22 = vmax.f32 %v1498_v6, 0.0 }
 0x306   : > { %v2131_v44 = vpack.c.bf16 %v1576_v23, %v1575_v39 }
 0x307   : > { %v2125_v3 = vpack.c.bf16 %v1574_v22, %v1573_v60 }
 0x309   : > { %2127 = vmatprep.subr.msk.bf16.mxu0 %vm2999_vm1, %v2125_v3 }
 0x30a   : > { %2130 = vmatpush3.bf16.xpose.msk.msra.mxu0 %vm2999_vm1, %v2960_v11 }
 0x30b   : > { %2133 = vmatprep.subr.msk.bf16.mxu0 %vm2999_vm1, %v2131_v44 }
 0x312   : > { %2136 = vmatpush3.bf16.xpose.msk.msra.mxu0 %vm2999_vm1, %v2958_v55 }
 0x320   : > { %v2115_v1 = vpop.f32.mrb[20].mxu1 }
 0x321   : > { %v1519_v52 = vadd.f32 %v2115_v1, %v2952_v49  ;;  %v1510_v10 = vpop.f32.mrb[21].mxu1 }
 0x322   : > { %v1511_v42 = vadd.f32 %v2952_v49, %v1510_v10  ;;  %v2116_v61 = vpop.f32.mrb[22].mxu1 }
 0x323   : > { %v1522_v45 = vadd.f32 %v2116_v61, %v2952_v49  ;;  %v1513_v17 = vpop.f32.mrb[23].mxu1  ;;  %v1579_v11 = vmax.f32 %v1519_v52, 0.0 }
 0x324   : > { %v1514_v2 = vadd.f32 %v2952_v49, %v1513_v17  ;;  %v1577_v19 = vmax.f32 %v1511_v42, 0.0 }
 0x325   : > { %v1580_v38 = vmax.f32 %v1522_v45, 0.0 }
 0x326   : > { %v1578_v20 = vmax.f32 %v1514_v2, 0.0 }
 0x327   : > { %v2143_v56 = vpack.c.bf16 %v1580_v38, %v1579_v11 }
 0x328   : > { %v2137_v24 = vpack.c.bf16 %v1578_v20, %v1577_v19 }
 0x32a   : > { %2139 = vmatprep.subr.msk.bf16.mxu0 %vm2999_vm1, %v2137_v24 }
 0x32b   : > { %2142 = vmatpush3.bf16.xpose.msk.msra.mxu0 %vm2999_vm1, %v2968_v48 }
 0x32c   : > { %2145 = vmatprep.subr.msk.bf16.mxu0 %vm2999_vm1, %v2143_v56 }
 0x333   : > { %2148 = vmatpush3.bf16.xpose.msk.msra.mxu0 %vm2999_vm1, %v2966_v21 }
 0x345   : > { %v2119_v55 = vpop.f32.mrb[24].mxu1 }
 0x346   : > { %v1535_v12 = vadd.f32 %v2119_v55, %v2952_v49  ;;  %v1526_v30 = vpop.f32.mrb[25].mxu1 }
 0x347   : > { %v1527_v16 = vadd.f32 %v2952_v49, %v1526_v30  ;;  %v2120_v57 = vpop.f32.mrb[26].mxu1 }
 0x348   : > { %v1538_v25 = vadd.f32 %v2120_v57, %v2952_v49  ;;  %v1529_v35 = vpop.f32.mrb[27].mxu1  ;;  %v1583_v48 = vmax.f32 %v1535_v12, 0.0 }
 0x349   : > { %v1530_v46 = vadd.f32 %v2952_v49, %v1529_v35  ;;  %v1581_v28 = vmax.f32 %v1527_v16, 0.0 }
 0x34a   : > { %v1584_v27 = vmax.f32 %v1538_v25, 0.0 }
 0x34b   : > { %v1582_v31 = vmax.f32 %v1530_v46, 0.0 }
 0x34c   : > { %v2155_v58 = vpack.c.bf16 %v1584_v27, %v1583_v48 }
 0x34d   : > { %v2149_v54 = vpack.c.bf16 %v1582_v31, %v1581_v28 }
 0x34f   : > { %2151 = vmatprep.subr.msk.bf16.mxu0 %vm2999_vm1, %v2149_v54 }
 0x350   : > { %2154 = vmatpush3.bf16.xpose.msk.msra.mxu0 %vm2999_vm1, %v2976_v59 }
 0x351   : > { %2157 = vmatprep.subr.msk.bf16.mxu0 %vm2999_vm1, %v2155_v58 }
 0x358   : > { %2160 = vmatpush3.bf16.xpose.msk.msra.mxu0 %vm2999_vm1, %v2974_v37 }
 0x366   : > { %v2123_v21 = vpop.f32.mrb[28].mxu1 }
 0x367   : > { %v1551_v63 = vadd.f32 %v2123_v21, %v2952_v49  ;;  %v1542_v32 = vpop.f32.mrb[29].mxu1 }
 0x368   : > { %v1543_v36 = vadd.f32 %v2952_v49, %v1542_v32  ;;  %v2124_v41 = vpop.f32.mrb[30].mxu1 }
 0x369   : > { %v1554_v33 = vadd.f32 %v2124_v41, %v2952_v49  ;;  %v1545_v43 = vpop.f32.mrb[31].mxu1  ;;  %v1587_v59 = vmax.f32 %v1551_v63, 0.0 }
 0x36a   : > { %v1546_v62 = vadd.f32 %v2952_v49, %v1545_v43  ;;  %v1585_v18 = vmax.f32 %v1543_v36, 0.0  ;;  %v1594_v49 = vpop.permute.xlu1 %1593 }
 0x36b   : > { %v1588_v7 = vmax.f32 %v1554_v33, 0.0  ;;  %v1599_v37 = vrot.slane %v1594_v49, %v532_v8 }
 0x36c   : > { %v1586_v34 = vmax.f32 %v1546_v62, 0.0 }
 0x36d   : > { %v2167_v47 = vpack.c.bf16 %v1588_v7, %v1587_v59 }
 0x36e   : > { %v2161_v4 = vpack.c.bf16 %v1586_v34, %v1585_v18 }
 0x370   : > { %2163 = vmatprep.subr.msk.bf16.mxu0 %vm2999_vm1, %v2161_v4 }
 0x371   : > { %2166 = vmatpush3.bf16.xpose.msk.msra.mxu0 %vm2999_vm1, %v2984_v51 }
 0x372   : > { %2169 = vmatprep.subr.msk.bf16.mxu0 %vm2999_vm1, %v2167_v47 }
 0x379   : > { %2172 = vmatpush3.bf16.xpose.msk.msra.mxu0 %vm2999_vm1, %v2982_v50 }
 0x380   : > { %2028 = vmatmul.mubr.msk.f32.vlgmr.msra.gmra.mrb[32].mxu0 %vm1600_vm0, %v2989_v26  ;;  %v2354_v26 = vmov 1966171168  }
 0x381   : > { %v1787_v23 = vunpack.c.l.s4 %v2354_v26 }
 0x383   : > { %v1788_v8 = vunpack.c.0.s8 %v1787_v23 }
 0x385   : > { %v1791_v22 = vsub.s32 %v1788_v8, %v2665_v5 }
 0x453   : > { %v1766_v29 = vpop.f32.mrb[32].mxu0 }
 0x454   : > { %v1767_v13 = vadd.f32 %v1766_v29, %v1599_v37  ;;  %v1768_v9 = vpop.f32.mrb[33].mxu0 }
 0x455   : > { %v1769_v15 = vadd.f32 %v1768_v9, %v1599_v37 }
 0x456   : > { %v1939_v51 = vmul.f32 -1.442695, %v1767_v13 }
 0x457   : > { %v1940_v14 = vmul.f32 -1.442695, %v1769_v15 }
 0x458   : > { %2279 = vpow2.f32 %v1939_v51 }
 0x459   : > { %2281 = vpow2.f32 %v1940_v14 }
 0x462   : > { %v2280_v40 = vpop.eup %2279 }
 0x463   : > { %v2282_v6 = vpop.eup %2281  ;;  %v1777_v39 = vadd.f32 1.0, %v2280_v40 }
 0x464   : > { %v1778_v50 = vadd.f32 1.0, %v2282_v6 }
 0x465   : > { %2283 = vrcp.f32 %v1777_v39 }
 0x466   : > { %2285 = vrcp.f32 %v1778_v50 }
 0x46f   : > { %v2284_v60 = vpop.eup %2283 }
 0x470   : > { %v2286_v44 = vpop.eup %2285 }
 0x471   : > { %v1785_v53 = vcombine.low %v2284_v60, %v2286_v44 }
 0x473   : > { %v1792_v3 = vrot.slane %v1785_v53, %v1791_v22 }
 0x475   : > { %v1799_v1 = vrot.slane %v1792_v3, %v1791_v22 }
 0x477   : > { %1805 = vst.msk [vmem:[%s328_s17] sm:$0x3] %vm1803_vm2, %v1799_v1 }
 0x478   : > { %2300 = shalt.err (!%p2297_p3)
}
 0x479   : > { %s2301_s22 = scalar_lea.hbm %s3066_s24, 32  ;;  %s2305_s15 = scalar_lea.hbm %s3117_s9, 64 }
 0x47a   : > { %p2302_p4 = scmp.ne.s32.totalorder %s3066_s24, %s2301_s22  ;;  %p2306_p9 = scmp.lt.u32.totalorder %s3066_s24, %s3117_s9 }
 0x47b   : > { %p2307_p10 = scmp.lt.u32.totalorder %s2305_s15, %s2301_s22  ;;  %p2309_p12 = scmp.lt.u32.totalorder %s2301_s22, %s3066_s24 }
 0x47c   : > { %p2303_p7 = pnand %p2302_p4, %p2444_p5 }
 0x47d   : > { %p2308_p11 = por %p2307_p10, %p2306_p9 }
 0x47e   : > { %p2304_p8 = pneg %p2303_p7 }
 0x47f   : > { %p2310_p13 = por %p2309_p12, %p2308_p11 }
 0x481   : > { %p2311_p0 = pnand %p2310_p13, %p2304_p8 }
 0x483   : > { %2314 = shalt.err (!%p2311_p0)
}
 0x484   : > { %2173 = dma.vmem_to_hbm [thread:$0]  (%p2444_p5), %s3068_s18, 32, %s3066_s24, %s1807_s25  }
 0x485 PF: > { %p2179_p1 = scmp.ge.s32.totalorder %s2349_s14, 2  ;;  %s1833_s23 = sand.u32 1, %s2337_s11  }
 0x486   : > { %s1834_s26 = scalar_lea.sflag [#allocation4], %s1833_s23 }
 0x487   : > { %p2176_p2 = pnand %p2179_p1, %p2448_p6 }
 0x489   : > { %2332 = dma.done.wait (!%p2176_p2), %s1834_s26, 32  }
 0x48a   : > { %2334 = vsyncadd (!%p2176_p2), %s1834_s26, 4294967264  ;;  %p21_p3 = scmp.ge.s32.totalorder %s2432_s16, 4   ;;  %s3122_s11 = smov %s2341_s12 }
 0x48b   : > { %s3123_s12 = smov %s2345_s13  ;;  %s3124_s13 = smov %s2442_s19 }
 0x48c   : > { %s3125_s14 = smov %s2432_s16  ;;  %23 = sbr.rel (!%p21_p3) target bundleno = 6 (0x6), region = 91 }
 0x493   :  { %1839 = vsyncpa [#allocation4], 1 }
 0x494   :  { %1841 = vsyncpa [#allocation4 + $0x1], 1 }

</bundles_post_ra>
